<compile_context>
chip_gen: v5e
topology: v5e:2x2
jax: 0.10.0
libtpu: 0.0.40
codegen_flags: <defaults>
</compile_context>

<pallas_src>
import functools

import jax
import jax.numpy as jnp
from jax import lax
from jax.experimental import pallas as pl
from jax.experimental.pallas import tpu as pltpu

_HB = 128  # halo-chunk width = one full lane group


def _round_up(n, m):
    return (n + m - 1) // m * m


def _cdiv(a, b):
    return (a + b - 1) // b


def _ffn_kernel(xp_ref, xc_ref, xn_ref, mp_ref, mc_ref, mn_ref,
                w1_ref, b1_ref, w2_ref, b2_ref, o_ref,
                xw_ref, x1_ref, hm_ref, mw_ref, *, K, activation):
    # xp/xc/xn_ref: (1, Cin_p, 128) / (1, Cin_p, Tt) / (1, Cin_p, 128)
    #               previous halo chunk / current tile / next halo chunk of x
    # mp/mc/mn_ref: matching mask chunks, (1, 1, 128) / (1, 1, Tt) / (1, 1, 128)
    # w1_ref: (Ch_p, K*Cin_p)  conv_1 weights, im2col layout
    # b1_ref: (Ch_p, 1) f32
    # w2_ref: (K, Cout_p, Ch_p) conv_2 weights, one (Cout_p, Ch_p) slab per tap
    # b2_ref: (Cout_p, 1) f32
    # o_ref:  (1, Cout_p, Tt)
    # xw_ref: (Cin_p, 128 + Tt + 128) scratch: masked haloed input window
    # x1_ref: (K*Cin_p, Tt + 128)     scratch: conv_1 im2col slab
    # hm_ref: (Ch_p, Tt + 128)        scratch: masked hidden activations
    # mw_ref: (1, 128 + Tt + 128)     scratch: mask window
    pad = K // 2
    halo = 2 * pad
    Cin_p = xc_ref.shape[1]
    Tt = xc_ref.shape[2]
    L1p = x1_ref.shape[1]                  # Tt + 128, 128-rounded conv_1 width
    off1 = _HB - halo                      # xw column of conv_1's first tap

    # ---- mask window: times [i*Tt - 128, (i+1)*Tt + 128), aligned copies ----
    mw_ref[:, :_HB] = mp_ref[0]
    mw_ref[:, _HB:_HB + Tt] = mc_ref[0]
    mw_ref[:, _HB + Tt:] = mn_ref[0]

    # ---- masked, haloed input (x * x_mask); aligned, mask fused into copy ----
    xw_ref[:, :_HB] = xp_ref[0] * mp_ref[0]
    xw_ref[:, _HB:_HB + Tt] = xc_ref[0] * mc_ref[0]
    xw_ref[:, _HB + Tt:] = xn_ref[0] * mn_ref[0]

    # ---- conv_1: im2col slab (Cin_p is shallow) + a single MXU matmul ----
    for k in range(K):                                   # K static -> unrolled
        x1_ref[k * Cin_p:(k + 1) * Cin_p, :] = xw_ref[:, off1 + k:off1 + k + L1p]
    h = jnp.dot(w1_ref[...], x1_ref[...],
                preferred_element_type=jnp.float32)      # (Ch_p, L1p) f32
    h = h + b1_ref[...]
    if activation == "gelu":
        h = h * jax.nn.sigmoid(1.702 * h)
    else:
        h = jnp.maximum(h, 0.0)
    # TODO(synk): dropout implemented only for p_dropout=0.0 / eval mode.

    # hidden column c <-> time i*Tt - pad + c; mask it before conv_2
    hm_ref[...] = (h * mw_ref[:, _HB - pad:_HB - pad + L1p]).astype(hm_ref.dtype)

    # ---- conv_2: K accumulating MXU matmuls, no im2col slab (Ch_p is deep) ----
    y = jnp.dot(w2_ref[0], hm_ref[:, 0:Tt], preferred_element_type=jnp.float32)
    for k in range(1, K):
        y = y + jnp.dot(w2_ref[k], hm_ref[:, k:k + Tt],
                        preferred_element_type=jnp.float32)
    y = y + b2_ref[...]

    o_ref[0] = (y * mw_ref[:, _HB:_HB + Tt]).astype(o_ref.dtype)  # final mask


def ffn_forward(x, x_mask, w1, b1, w2, b2, activation=None, t_tile=512,
                compute_dtype=jnp.bfloat16):
    """FFN forward (eval mode). x: (B, Cin, T), x_mask: (B, 1, T); weights in
    torch Conv1d layout: w1 (Ch, Cin, K), w2 (Cout, Ch, K)."""
    B, Cin, T = x.shape
    Ch, _, K = w1.shape
    Cout = w2.shape[0]
    assert K % 2 == 1, "FFN kernel assumes odd kernel_size (padding = K // 2)"
    pad = K // 2
    assert 2 * pad <= _HB, "conv halo must fit inside one 128-lane chunk"

    cmult = 16 if compute_dtype == jnp.bfloat16 else 8
    Cin_p = _round_up(Cin, cmult)
    Ch_p = _round_up(Ch, cmult)
    Cout_p = _round_up(Cout, cmult)

    # Lane-dense time tile (multiple of 128).  Per-generation guidance:
    # ~1024 on v6e (128 MiB VMEM), ~512 on v7x (64 MiB), ~256 on v5e (16 MiB
    # scoped default).  Default footprint fits all defaults, so no
    # vmem_limit_bytes override is needed.
    Tt = _round_up(min(int(t_tile), _round_up(T, _HB)), _HB)
    if B == 1 and T > _HB:          # keep >= 2 grid points for 2-TC (v7x) chips
        Tt = min(Tt, _round_up(_cdiv(T, 2), _HB))
    T_pad = _round_up(T, Tt)
    num_t = T_pad // Tt
    n_hb = Tt // _HB                # 128-lane chunks per time tile

    # One zero tile on each side supplies the (zero) halo for the first / last
    # time tiles; channel padding is zero; mask padding is zero (masks tails).
    x_ext = jnp.pad(x.astype(compute_dtype),
                    ((0, 0), (0, Cin_p - Cin), (Tt, Tt + T_pad - T)))
    m_ext = jnp.pad(x_mask.astype(compute_dtype),
                    ((0, 0), (0, 0), (Tt, Tt + T_pad - T)))

    # conv_1 weights, im2col layout: w1r[co, k*Cin_p + ci] = w1[co, ci, k]
    w1p = jnp.pad(w1.astype(compute_dtype),
                  ((0, Ch_p - Ch), (0, Cin_p - Cin), (0, 0)))
    w1r = jnp.transpose(w1p, (0, 2, 1)).reshape(Ch_p, K * Cin_p)
    # conv_2 weights per tap: w2r[k, co, ch] = w2[co, ch, k]
    w2p = jnp.pad(w2.astype(compute_dtype),
                  ((0, Cout_p - Cout), (0, Ch_p - Ch), (0, 0)))
    w2r = jnp.transpose(w2p, (2, 0, 1))
    b1c = jnp.pad(b1.astype(jnp.float32), (0, Ch_p - Ch)).reshape(Ch_p, 1)
    b2c = jnp.pad(b2.astype(jnp.float32), (0, Cout_p - Cout)).reshape(Cout_p, 1)

    XW = _HB + Tt + _HB             # haloed window width (all copies aligned)
    L1p = Tt + _HB                  # conv_1 output width, 128-rounded

    kernel = functools.partial(_ffn_kernel, K=K, activation=activation)

    def _call(single_buffer_weights):
        def const_spec(shape):
            idx = lambda b, i, _n=len(shape): (0,) * _n
            if single_buffer_weights:
                try:  # grid-invariant operands: no need for double buffering
                    return pl.BlockSpec(shape, idx, pipeline_mode=pl.Buffered(1))
                except (TypeError, ValueError):
                    pass
            return pl.BlockSpec(shape, idx)

        return pl.pallas_call(
            kernel,
            out_shape=jax.ShapeDtypeStruct((B, Cout_p, T_pad), x.dtype),
            grid_spec=pltpu.PrefetchScalarGridSpec(
                num_scalar_prefetch=0,
                grid=(B, num_t),
                in_specs=[
                    # x: prev halo chunk / current tile / next halo chunk
                    pl.BlockSpec((1, Cin_p, _HB),
                                 lambda b, i: (b, 0, (i + 1) * n_hb - 1)),
                    pl.BlockSpec((1, Cin_p, Tt), lambda b, i: (b, 0, i + 1)),
                    pl.BlockSpec((1, Cin_p, _HB),
                                 lambda b, i: (b, 0, (i + 2) * n_hb)),
                    # mask: tiled exactly like x
                    pl.BlockSpec((1, 1, _HB),
                                 lambda b, i: (b, 0, (i + 1) * n_hb - 1)),
                    pl.BlockSpec((1, 1, Tt), lambda b, i: (b, 0, i + 1)),
                    pl.BlockSpec((1, 1, _HB),
                                 lambda b, i: (b, 0, (i + 2) * n_hb)),
                    # grid-invariant weights / biases
                    const_spec((Ch_p, K * Cin_p)),
                    const_spec((Ch_p, 1)),
                    const_spec((K, Cout_p, Ch_p)),
                    const_spec((Cout_p, 1)),
                ],
                out_specs=pl.BlockSpec((1, Cout_p, Tt), lambda b, i: (b, 0, i)),
                scratch_shapes=[
                    pltpu.VMEM((Cin_p, XW), compute_dtype),       # masked x win
                    pltpu.VMEM((K * Cin_p, L1p), compute_dtype),  # conv_1 slab
                    pltpu.VMEM((Ch_p, L1p), compute_dtype),       # masked hidden
                    pltpu.VMEM((1, XW), compute_dtype),           # mask window
                ],
            ),
            compiler_params=pltpu.CompilerParams(
                dimension_semantics=("parallel", "parallel")),
        )(x_ext, x_ext, x_ext, m_ext, m_ext, m_ext, w1r, b1c, w2r, b2c)

    try:
        out = _call(True)
    except Exception:  # fall back to default (double-buffered) weight specs
        out = _call(False)

    # NOTE: this trim is an extra HBM round trip of the output; callers that
    # tolerate the padded (B, Cout_p, T_pad) result (tail already zero-masked)
    # can skip it.
    return out[:, :Cout, :T]


# ------------------------- pure-JAX reference -------------------------------
def _conv1d_ref(x, w, b, pad):
    y = lax.conv_general_dilated(
        x, w, window_strides=(1,), padding=[(pad, pad)],
        dimension_numbers=("NCH", "OIH", "NCH"),
        precision=lax.Precision.HIGHEST)
    return y + b[None, :, None]


def ffn_reference(x, x_mask, w1, b1, w2, b2, activation=None):
    K = w1.shape[-1]
    pad = K // 2
    h = _conv1d_ref(x * x_mask, w1, b1, pad)
    if activation == "gelu":
        h = h * jax.nn.sigmoid(1.702 * h)
    else:
        h = jnp.maximum(h, 0.0)
    y = _conv1d_ref(h * x_mask, w2, b2, pad)
    return y * x_mask


if __name__ == "__main__":
    # Small shapes consistent with FFN: Conv1d over (B, C, T).  T=300 with
    # t_tile=128 exercises multiple time tiles, halo chunks and time padding.
    B, Cin, Cout, Ch, T = 2, 8, 8, 32, 300

    def make_inputs(key, K):
        kx, kw1, kb1, kw2, kb2 = jax.random.split(key, 5)
        x = jax.random.normal(kx, (B, Cin, T), dtype=jnp.float32)
        lengths = jnp.array([T, T - 57])          # second batch has masked tail
        x_mask = (jnp.arange(T)[None, :] < lengths[:, None]).astype(jnp.float32)
        x_mask = x_mask[:, None, :]               # (B, 1, T)
        s1 = 1.0 / (Cin * K) ** 0.5
        s2 = 1.0 / (Ch * K) ** 0.5
        w1 = jax.random.uniform(kw1, (Ch, Cin, K), jnp.float32, -s1, s1)
        b1 = jax.random.uniform(kb1, (Ch,), jnp.float32, -s1, s1)
        w2 = jax.random.uniform(kw2, (Cout, Ch, K), jnp.float32, -s2, s2)
        b2 = jax.random.uniform(kb2, (Cout,), jnp.float32, -s2, s2)
        return x, x_mask, w1, b1, w2, b2

    x, x_mask, w1, b1, w2, b2 = make_inputs(jax.random.PRNGKey(0), 3)

    for act in (None, "gelu"):
        ref = ffn_reference(x, x_mask, w1, b1, w2, b2, activation=act)

        # fast path: bf16 matmul operands, f32 MXU accumulation
        out_bf16 = jax.block_until_ready(
            ffn_forward(x, x_mask, w1, b1, w2, b2, activation=act, t_tile=128))
        assert out_bf16.shape == (B, Cout, T)
        assert jnp.allclose(out_bf16, ref, atol=6e-2, rtol=6e-2), (
            act, float(jnp.max(jnp.abs(out_bf16 - ref))))

        # f32 path (checks the indexing math; tolerance absorbs MXU f32
        # pass-precision differences — indexing bugs give O(0.1+) errors)
        out_f32 = jax.block_until_ready(
            ffn_forward(x, x_mask, w1, b1, w2, b2, activation=act, t_tile=128,
                        compute_dtype=jnp.float32))
        assert out_f32.shape == (B, Cout, T)
        assert jnp.allclose(out_f32, ref, atol=3e-2, rtol=3e-2), (
            act, float(jnp.max(jnp.abs(out_f32 - ref))))

    # wider kernel (K=5, halo=4) + larger tile: checks the general halo math
    x5, m5, w15, b15, w25, b25 = make_inputs(jax.random.PRNGKey(1), 5)
    ref5 = ffn_reference(x5, m5, w15, b15, w25, b25, activation="gelu")
    out5 = jax.block_until_ready(
        ffn_forward(x5, m5, w15, b15, w25, b25, activation="gelu", t_tile=256,
                    compute_dtype=jnp.float32))
    assert out5.shape == (B, Cout, T)
    assert jnp.allclose(out5, ref5, atol=3e-2, rtol=3e-2), float(
        jnp.max(jnp.abs(out5 - ref5)))

    print("KERNEL_OK")
</pallas_src>

<mosaic_0001>
module attributes {stable_mosaic.version = 11 : i64} {
  func.func @_ffn_kernel(%arg0: i32, %arg1: i32, %arg2: memref<1x16x128xbf16, #tpu.memory_space<vmem>>, %arg3: memref<1x16x128xbf16, #tpu.memory_space<vmem>>, %arg4: memref<1x16x128xbf16, #tpu.memory_space<vmem>>, %arg5: memref<1x1x128xbf16, #tpu.memory_space<vmem>>, %arg6: memref<1x1x128xbf16, #tpu.memory_space<vmem>>, %arg7: memref<1x1x128xbf16, #tpu.memory_space<vmem>>, %arg8: memref<32x48xbf16, #tpu.memory_space<vmem>>, %arg9: memref<32x1xf32, #tpu.memory_space<vmem>>, %arg10: memref<3x16x32xbf16, #tpu.memory_space<vmem>>, %arg11: memref<16x1xf32, #tpu.memory_space<vmem>>, %arg12: memref<1x16x128xf32, #tpu.memory_space<vmem>>, %arg13: memref<16x384xbf16, #tpu.memory_space<vmem>>, %arg14: memref<48x256xbf16, #tpu.memory_space<vmem>>, %arg15: memref<32x256xbf16, #tpu.memory_space<vmem>>, %arg16: memref<1x384xbf16, #tpu.memory_space<vmem>>) attributes {dimension_semantics = [#tpu.dimension_semantics<parallel>, #tpu.dimension_semantics<parallel>], iteration_bounds = array<i64: 2, 3>, scalar_prefetch = 0 : i64, scratch_operands = 4 : i64, tpu.core_type = #tpu.core_type<tc>, window_params = [{transform_indices = @transform_0, window_bounds = array<i64: 1, 16, 128>}, {transform_indices = @transform_1, window_bounds = array<i64: 1, 16, 128>}, {transform_indices = @transform_2, window_bounds = array<i64: 1, 16, 128>}, {transform_indices = @transform_3, window_bounds = array<i64: 1, 1, 128>}, {transform_indices = @transform_4, window_bounds = array<i64: 1, 1, 128>}, {transform_indices = @transform_5, window_bounds = array<i64: 1, 1, 128>}, {pipeline_mode = #tpu.pipeline_mode<synchronous>, transform_indices = @transform_6, window_bounds = array<i64: 32, 48>}, {pipeline_mode = #tpu.pipeline_mode<synchronous>, transform_indices = @transform_7, window_bounds = array<i64: 32, 1>}, {pipeline_mode = #tpu.pipeline_mode<synchronous>, transform_indices = @transform_8, window_bounds = array<i64: 3, 16, 32>}, {pipeline_mode = #tpu.pipeline_mode<synchronous>, transform_indices = @transform_9, window_bounds = array<i64: 16, 1>}, {transform_indices = @transform_10, window_bounds = array<i64: 1, 16, 128>}]} {
    %c0 = arith.constant 0 : index
    %c0_0 = arith.constant 0 : index
    %c0_1 = arith.constant 0 : index
    %0 = vector.load %arg5[%c0, %c0_0, %c0_1] : memref<1x1x128xbf16, #tpu.memory_space<vmem>>, vector<1x1x128xbf16>
    %1 = vector.shape_cast %0 : vector<1x1x128xbf16> to vector<1x128xbf16>
    %c0_2 = arith.constant 0 : index
    %c0_3 = arith.constant 0 : index
    %2 = vector.load %arg16[%c0_2, %c0_3] : memref<1x384xbf16, #tpu.memory_space<vmem>>, vector<1x128xbf16>
    tpu.vector_store %arg16[%c0_2, %c0_3], %1 {strides = array<i32>} : memref<1x384xbf16, #tpu.memory_space<vmem>>, vector<1x128xbf16>,
    %c0_4 = arith.constant 0 : index
    %c0_5 = arith.constant 0 : index
    %c0_6 = arith.constant 0 : index
    %3 = vector.load %arg6[%c0_4, %c0_5, %c0_6] : memref<1x1x128xbf16, #tpu.memory_space<vmem>>, vector<1x1x128xbf16>
    %4 = vector.shape_cast %3 : vector<1x1x128xbf16> to vector<1x128xbf16>
    %c0_7 = arith.constant 0 : index
    %c128 = arith.constant 128 : index
    %5 = vector.load %arg16[%c0_7, %c128] : memref<1x384xbf16, #tpu.memory_space<vmem>>, vector<1x128xbf16>
    tpu.vector_store %arg16[%c0_7, %c128], %4 {strides = array<i32>} : memref<1x384xbf16, #tpu.memory_space<vmem>>, vector<1x128xbf16>,
    %c0_8 = arith.constant 0 : index
    %c0_9 = arith.constant 0 : index
    %c0_10 = arith.constant 0 : index
    %6 = vector.load %arg7[%c0_8, %c0_9, %c0_10] : memref<1x1x128xbf16, #tpu.memory_space<vmem>>, vector<1x1x128xbf16>
    %7 = vector.shape_cast %6 : vector<1x1x128xbf16> to vector<1x128xbf16>
    %c0_11 = arith.constant 0 : index
    %c256 = arith.constant 256 : index
    %8 = vector.load %arg16[%c0_11, %c256] : memref<1x384xbf16, #tpu.memory_space<vmem>>, vector<1x128xbf16>
    tpu.vector_store %arg16[%c0_11, %c256], %7 {strides = array<i32>} : memref<1x384xbf16, #tpu.memory_space<vmem>>, vector<1x128xbf16>,
    %c0_12 = arith.constant 0 : index
    %c0_13 = arith.constant 0 : index
    %c0_14 = arith.constant 0 : index
    %9 = vector.load %arg2[%c0_12, %c0_13, %c0_14] : memref<1x16x128xbf16, #tpu.memory_space<vmem>>, vector<1x16x128xbf16>
    %10 = vector.shape_cast %9 : vector<1x16x128xbf16> to vector<16x128xbf16>
    %c0_15 = arith.constant 0 : index
    %c0_16 = arith.constant 0 : index
    %c0_17 = arith.constant 0 : index
    %11 = vector.load %arg5[%c0_15, %c0_16, %c0_17] : memref<1x1x128xbf16, #tpu.memory_space<vmem>>, vector<1x1x128xbf16>
    %12 = vector.shape_cast %11 : vector<1x1x128xbf16> to vector<1x128xbf16>
    %13 = vector.broadcast %12 : vector<1x128xbf16> to vector<16x128xbf16>
    %14 = arith.mulf %10, %13 : vector<16x128xbf16>
    %c0_18 = arith.constant 0 : index
    %c0_19 = arith.constant 0 : index
    %15 = vector.load %arg13[%c0_18, %c0_19] : memref<16x384xbf16, #tpu.memory_space<vmem>>, vector<16x128xbf16>
    tpu.vector_store %arg13[%c0_18, %c0_19], %14 {strides = array<i32>} : memref<16x384xbf16, #tpu.memory_space<vmem>>, vector<16x128xbf16>,
    %c0_20 = arith.constant 0 : index
    %c0_21 = arith.constant 0 : index
    %c0_22 = arith.constant 0 : index
    %16 = vector.load %arg3[%c0_20, %c0_21, %c0_22] : memref<1x16x128xbf16, #tpu.memory_space<vmem>>, vector<1x16x128xbf16>
    %17 = vector.shape_cast %16 : vector<1x16x128xbf16> to vector<16x128xbf16>
    %c0_23 = arith.constant 0 : index
    %c0_24 = arith.constant 0 : index
    %c0_25 = arith.constant 0 : index
    %18 = vector.load %arg6[%c0_23, %c0_24, %c0_25] : memref<1x1x128xbf16, #tpu.memory_space<vmem>>, vector<1x1x128xbf16>
    %19 = vector.shape_cast %18 : vector<1x1x128xbf16> to vector<1x128xbf16>
    %20 = vector.broadcast %19 : vector<1x128xbf16> to vector<16x128xbf16>
    %21 = arith.mulf %17, %20 : vector<16x128xbf16>
    %c0_26 = arith.constant 0 : index
    %c128_27 = arith.constant 128 : index
    %22 = vector.load %arg13[%c0_26, %c128_27] : memref<16x384xbf16, #tpu.memory_space<vmem>>, vector<16x128xbf16>
    tpu.vector_store %arg13[%c0_26, %c128_27], %21 {strides = array<i32>} : memref<16x384xbf16, #tpu.memory_space<vmem>>, vector<16x128xbf16>,
    %c0_28 = arith.constant 0 : index
    %c0_29 = arith.constant 0 : index
    %c0_30 = arith.constant 0 : index
    %23 = vector.load %arg4[%c0_28, %c0_29, %c0_30] : memref<1x16x128xbf16, #tpu.memory_space<vmem>>, vector<1x16x128xbf16>
    %24 = vector.shape_cast %23 : vector<1x16x128xbf16> to vector<16x128xbf16>
    %c0_31 = arith.constant 0 : index
    %c0_32 = arith.constant 0 : index
    %c0_33 = arith.constant 0 : index
    %25 = vector.load %arg7[%c0_31, %c0_32, %c0_33] : memref<1x1x128xbf16, #tpu.memory_space<vmem>>, vector<1x1x128xbf16>
    %26 = vector.shape_cast %25 : vector<1x1x128xbf16> to vector<1x128xbf16>
    %27 = vector.broadcast %26 : vector<1x128xbf16> to vector<16x128xbf16>
    %28 = arith.mulf %24, %27 : vector<16x128xbf16>
    %c0_34 = arith.constant 0 : index
    %c256_35 = arith.constant 256 : index
    %29 = vector.load %arg13[%c0_34, %c256_35] : memref<16x384xbf16, #tpu.memory_space<vmem>>, vector<16x128xbf16>
    tpu.vector_store %arg13[%c0_34, %c256_35], %28 {strides = array<i32>} : memref<16x384xbf16, #tpu.memory_space<vmem>>, vector<16x128xbf16>,
    %c0_36 = arith.constant 0 : index
    %c126 = arith.constant 126 : index
    %30 = vector.load %arg13[%c0_36, %c126] : memref<16x384xbf16, #tpu.memory_space<vmem>>, vector<16x256xbf16>
    %c0_37 = arith.constant 0 : index
    %c0_38 = arith.constant 0 : index
    %31 = vector.load %arg14[%c0_37, %c0_38] : memref<48x256xbf16, #tpu.memory_space<vmem>>, vector<16x256xbf16>
    tpu.vector_store %arg14[%c0_37, %c0_38], %30 {strides = array<i32>} : memref<48x256xbf16, #tpu.memory_space<vmem>>, vector<16x256xbf16>,
    %c0_39 = arith.constant 0 : index
    %c127 = arith.constant 127 : index
    %32 = vector.load %arg13[%c0_39, %c127] : memref<16x384xbf16, #tpu.memory_space<vmem>>, vector<16x256xbf16>
    %c16 = arith.constant 16 : index
    %c0_40 = arith.constant 0 : index
    %33 = vector.load %arg14[%c16, %c0_40] : memref<48x256xbf16, #tpu.memory_space<vmem>>, vector<16x256xbf16>
    tpu.vector_store %arg14[%c16, %c0_40], %32 {strides = array<i32>} : memref<48x256xbf16, #tpu.memory_space<vmem>>, vector<16x256xbf16>,
    %c0_41 = arith.constant 0 : index
    %c128_42 = arith.constant 128 : index
    %34 = vector.load %arg13[%c0_41, %c128_42] : memref<16x384xbf16, #tpu.memory_space<vmem>>, vector<16x256xbf16>
    %c32 = arith.constant 32 : index
    %c0_43 = arith.constant 0 : index
    %35 = vector.load %arg14[%c32, %c0_43] : memref<48x256xbf16, #tpu.memory_space<vmem>>, vector<16x256xbf16>
    tpu.vector_store %arg14[%c32, %c0_43], %34 {strides = array<i32>} : memref<48x256xbf16, #tpu.memory_space<vmem>>, vector<16x256xbf16>,
    %c0_44 = arith.constant 0 : index
    %c0_45 = arith.constant 0 : index
    %36 = vector.load %arg8[%c0_44, %c0_45] : memref<32x48xbf16, #tpu.memory_space<vmem>>, vector<32x48xbf16>
    %c0_46 = arith.constant 0 : index
    %c0_47 = arith.constant 0 : index
    %37 = vector.load %arg14[%c0_46, %c0_47] : memref<48x256xbf16, #tpu.memory_space<vmem>>, vector<48x256xbf16>
    %cst = arith.constant dense<0.000000e+00> : vector<32x256xf32>
    %38 = tpu.matmul %36, %37, %cst {dimension_numbers = #tpu.dot_dimension_numbers<[1], [0], [0], [1], [0, 0, 1, 1], [], []>} : vector<32x48xbf16>, vector<48x256xbf16>, vector<32x256xf32> -> vector<32x256xf32>
    %c0_48 = arith.constant 0 : index
    %c0_49 = arith.constant 0 : index
    %39 = vector.load %arg9[%c0_48, %c0_49] : memref<32x1xf32, #tpu.memory_space<vmem>>, vector<32x1xf32>
    %40 = vector.broadcast %39 : vector<32x1xf32> to vector<32x256xf32>
    %41 = arith.addf %38, %40 : vector<32x256xf32>
    %cst_50 = arith.constant 0.000000e+00 : f32
    %42 = vector.broadcast %cst_50 : f32 to vector<32x256xf32>
    %43 = arith.maximumf %41, %42 : vector<32x256xf32>
    %c0_51 = arith.constant 0 : index
    %c127_52 = arith.constant 127 : index
    %44 = vector.load %arg16[%c0_51, %c127_52] : memref<1x384xbf16, #tpu.memory_space<vmem>>, vector<1x256xbf16>
    %45 = arith.extf %44 : vector<1x256xbf16> to vector<1x256xf32>
    %46 = vector.broadcast %45 : vector<1x256xf32> to vector<32x256xf32>
    %47 = arith.mulf %43, %46 : vector<32x256xf32>
    %48 = arith.truncf %47 : vector<32x256xf32> to vector<32x256xbf16>
    %c0_53 = arith.constant 0 : index
    %c0_54 = arith.constant 0 : index
    %49 = vector.load %arg15[%c0_53, %c0_54] : memref<32x256xbf16, #tpu.memory_space<vmem>>, vector<32x256xbf16>
    tpu.vector_store %arg15[%c0_53, %c0_54], %48 {strides = array<i32>} : memref<32x256xbf16, #tpu.memory_space<vmem>>, vector<32x256xbf16>,
    %c0_55 = arith.constant 0 : index
    %c0_56 = arith.constant 0 : index
    %c0_57 = arith.constant 0 : index
    %50 = vector.load %arg10[%c0_55, %c0_56, %c0_57] : memref<3x16x32xbf16, #tpu.memory_space<vmem>>, vector<1x16x32xbf16>
    %51 = vector.shape_cast %50 : vector<1x16x32xbf16> to vector<16x32xbf16>
    %c0_58 = arith.constant 0 : index
    %c0_59 = arith.constant 0 : index
    %52 = vector.load %arg15[%c0_58, %c0_59] : memref<32x256xbf16, #tpu.memory_space<vmem>>, vector<32x128xbf16>
    %cst_60 = arith.constant dense<0.000000e+00> : vector<16x128xf32>
    %53 = tpu.matmul %51, %52, %cst_60 {dimension_numbers = #tpu.dot_dimension_numbers<[1], [0], [0], [1], [0, 0, 1, 1], [], []>} : vector<16x32xbf16>, vector<32x128xbf16>, vector<16x128xf32> -> vector<16x128xf32>
    %c1 = arith.constant 1 : index
    %c0_61 = arith.constant 0 : index
    %c0_62 = arith.constant 0 : index
    %54 = vector.load %arg10[%c1, %c0_61, %c0_62] : memref<3x16x32xbf16, #tpu.memory_space<vmem>>, vector<1x16x32xbf16>
    %55 = vector.shape_cast %54 : vector<1x16x32xbf16> to vector<16x32xbf16>
    %c0_63 = arith.constant 0 : index
    %c1_64 = arith.constant 1 : index
    %56 = vector.load %arg15[%c0_63, %c1_64] : memref<32x256xbf16, #tpu.memory_space<vmem>>, vector<32x128xbf16>
    %cst_65 = arith.constant dense<0.000000e+00> : vector<16x128xf32>
    %57 = tpu.matmul %55, %56, %cst_65 {dimension_numbers = #tpu.dot_dimension_numbers<[1], [0], [0], [1], [0, 0, 1, 1], [], []>} : vector<16x32xbf16>, vector<32x128xbf16>, vector<16x128xf32> -> vector<16x128xf32>
    %58 = arith.addf %53, %57 : vector<16x128xf32>
    %c2 = arith.constant 2 : index
    %c0_66 = arith.constant 0 : index
    %c0_67 = arith.constant 0 : index
    %59 = vector.load %arg10[%c2, %c0_66, %c0_67] : memref<3x16x32xbf16, #tpu.memory_space<vmem>>, vector<1x16x32xbf16>
    %60 = vector.shape_cast %59 : vector<1x16x32xbf16> to vector<16x32xbf16>
    %c0_68 = arith.constant 0 : index
    %c2_69 = arith.constant 2 : index
    %61 = vector.load %arg15[%c0_68, %c2_69] : memref<32x256xbf16, #tpu.memory_space<vmem>>, vector<32x128xbf16>
    %cst_70 = arith.constant dense<0.000000e+00> : vector<16x128xf32>
    %62 = tpu.matmul %60, %61, %cst_70 {dimension_numbers = #tpu.dot_dimension_numbers<[1], [0], [0], [1], [0, 0, 1, 1], [], []>} : vector<16x32xbf16>, vector<32x128xbf16>, vector<16x128xf32> -> vector<16x128xf32>
    %63 = arith.addf %58, %62 : vector<16x128xf32>
    %c0_71 = arith.constant 0 : index
    %c0_72 = arith.constant 0 : index
    %64 = vector.load %arg11[%c0_71, %c0_72] : memref<16x1xf32, #tpu.memory_space<vmem>>, vector<16x1xf32>
    %65 = vector.broadcast %64 : vector<16x1xf32> to vector<16x128xf32>
    %66 = arith.addf %63, %65 : vector<16x128xf32>
    %c0_73 = arith.constant 0 : index
    %c128_74 = arith.constant 128 : index
    %67 = vector.load %arg16[%c0_73, %c128_74] : memref<1x384xbf16, #tpu.memory_space<vmem>>, vector<1x128xbf16>
    %68 = arith.extf %67 : vector<1x128xbf16> to vector<1x128xf32>
    %69 = vector.broadcast %68 : vector<1x128xf32> to vector<16x128xf32>
    %70 = arith.mulf %66, %69 : vector<16x128xf32>
    %c0_75 = arith.constant 0 : index
    %c0_76 = arith.constant 0 : index
    %c0_77 = arith.constant 0 : index
    %71 = vector.load %arg12[%c0_75, %c0_76, %c0_77] : memref<1x16x128xf32, #tpu.memory_space<vmem>>, vector<1x16x128xf32>
    %72 = vector.shape_cast %71 : vector<1x16x128xf32> to vector<16x128xf32>
    %73 = vector.shape_cast %70 : vector<16x128xf32> to vector<1x16x128xf32>
    tpu.vector_store %arg12[%c0_75, %c0_76, %c0_77], %73 {strides = array<i32>} : memref<1x16x128xf32, #tpu.memory_space<vmem>>, vector<1x16x128xf32>,
    return
  }
  func.func @transform_0(%arg0: i32, %arg1: i32) -> (i32, i32, i32) {
    %c1_i32 = arith.constant 1 : i32
    %0 = arith.addi %arg1, %c1_i32 : i32
    %c1_i32_0 = arith.constant 1 : i32
    %1 = arith.muli %0, %c1_i32_0 : i32
    %c1_i32_1 = arith.constant 1 : i32
    %2 = arith.subi %1, %c1_i32_1 : i32
    %c0_i32 = arith.constant 0 : i32
    %c0_i32_2 = arith.constant 0 : i32
    return %arg0, %c0_i32, %2 : i32, i32, i32
  }
  func.func @transform_1(%arg0: i32, %arg1: i32) -> (i32, i32, i32) {
    %c1_i32 = arith.constant 1 : i32
    %0 = arith.addi %arg1, %c1_i32 : i32
    %c0_i32 = arith.constant 0 : i32
    %c0_i32_0 = arith.constant 0 : i32
    return %arg0, %c0_i32, %0 : i32, i32, i32
  }
  func.func @transform_2(%arg0: i32, %arg1: i32) -> (i32, i32, i32) {
    %c2_i32 = arith.constant 2 : i32
    %0 = arith.addi %arg1, %c2_i32 : i32
    %c1_i32 = arith.constant 1 : i32
    %1 = arith.muli %0, %c1_i32 : i32
    %c0_i32 = arith.constant 0 : i32
    %c0_i32_0 = arith.constant 0 : i32
    return %arg0, %c0_i32, %1 : i32, i32, i32
  }
  func.func @transform_3(%arg0: i32, %arg1: i32) -> (i32, i32, i32) {
    %c1_i32 = arith.constant 1 : i32
    %0 = arith.addi %arg1, %c1_i32 : i32
    %c1_i32_0 = arith.constant 1 : i32
    %1 = arith.muli %0, %c1_i32_0 : i32
    %c1_i32_1 = arith.constant 1 : i32
    %2 = arith.subi %1, %c1_i32_1 : i32
    %c0_i32 = arith.constant 0 : i32
    %c0_i32_2 = arith.constant 0 : i32
    return %arg0, %c0_i32, %2 : i32, i32, i32
  }
  func.func @transform_4(%arg0: i32, %arg1: i32) -> (i32, i32, i32) {
    %c1_i32 = arith.constant 1 : i32
    %0 = arith.addi %arg1, %c1_i32 : i32
    %c0_i32 = arith.constant 0 : i32
    %c0_i32_0 = arith.constant 0 : i32
    return %arg0, %c0_i32, %0 : i32, i32, i32
  }
  func.func @transform_5(%arg0: i32, %arg1: i32) -> (i32, i32, i32) {
    %c2_i32 = arith.constant 2 : i32
    %0 = arith.addi %arg1, %c2_i32 : i32
    %c1_i32 = arith.constant 1 : i32
    %1 = arith.muli %0, %c1_i32 : i32
    %c0_i32 = arith.constant 0 : i32
    %c0_i32_0 = arith.constant 0 : i32
    return %arg0, %c0_i32, %1 : i32, i32, i32
  }
  func.func @transform_6(%arg0: i32, %arg1: i32) -> (i32, i32) {
    %c0_i32 = arith.constant 0 : i32
    %c0_i32_0 = arith.constant 0 : i32
    %c0_i32_1 = arith.constant 0 : i32
    return %c0_i32, %c0_i32_0 : i32, i32
  }
  func.func @transform_7(%arg0: i32, %arg1: i32) -> (i32, i32) {
    %c0_i32 = arith.constant 0 : i32
    %c0_i32_0 = arith.constant 0 : i32
    %c0_i32_1 = arith.constant 0 : i32
    return %c0_i32, %c0_i32_0 : i32, i32
  }
  func.func @transform_8(%arg0: i32, %arg1: i32) -> (i32, i32, i32) {
    %c0_i32 = arith.constant 0 : i32
    %c0_i32_0 = arith.constant 0 : i32
    %c0_i32_1 = arith.constant 0 : i32
    %c0_i32_2 = arith.constant 0 : i32
    return %c0_i32, %c0_i32_0, %c0_i32_1 : i32, i32, i32
  }
  func.func @transform_9(%arg0: i32, %arg1: i32) -> (i32, i32) {
    %c0_i32 = arith.constant 0 : i32
    %c0_i32_0 = arith.constant 0 : i32
    %c0_i32_1 = arith.constant 0 : i32
    return %c0_i32, %c0_i32_0 : i32, i32
  }
  func.func @transform_10(%arg0: i32, %arg1: i32) -> (i32, i32, i32) {
    %c0_i32 = arith.constant 0 : i32
    %c0_i32_0 = arith.constant 0 : i32
    return %arg0, %c0_i32, %arg1 : i32, i32, i32
  }
}

module attributes {stable_mosaic.version = 11 : i64} {
  func.func @_ffn_kernel(%arg0: i32, %arg1: i32, %arg2: memref<1x16x128xbf16, #tpu.memory_space<vmem>>, %arg3: memref<1x16x128xbf16, #tpu.memory_space<vmem>>, %arg4: memref<1x16x128xbf16, #tpu.memory_space<vmem>>, %arg5: memref<1x1x128xbf16, #tpu.memory_space<vmem>>, %arg6: memref<1x1x128xbf16, #tpu.memory_space<vmem>>, %arg7: memref<1x1x128xbf16, #tpu.memory_space<vmem>>, %arg8: memref<32x48xbf16, #tpu.memory_space<vmem>>, %arg9: memref<32x1xf32, #tpu.memory_space<vmem>>, %arg10: memref<3x16x32xbf16, #tpu.memory_space<vmem>>, %arg11: memref<16x1xf32, #tpu.memory_space<vmem>>, %arg12: memref<1x16x128xf32, #tpu.memory_space<vmem>>, %arg13: memref<16x384xbf16, #tpu.memory_space<vmem>>, %arg14: memref<48x256xbf16, #tpu.memory_space<vmem>>, %arg15: memref<32x256xbf16, #tpu.memory_space<vmem>>, %arg16: memref<1x384xbf16, #tpu.memory_space<vmem>>) attributes {dimension_semantics = [#tpu.dimension_semantics<parallel>, #tpu.dimension_semantics<parallel>], iteration_bounds = array<i64: 2, 3>, scalar_prefetch = 0 : i64, scratch_operands = 4 : i64, tpu.core_type = #tpu.core_type<tc>, window_params = [{transform_indices = @transform_0, window_bounds = array<i64: 1, 16, 128>}, {transform_indices = @transform_1, window_bounds = array<i64: 1, 16, 128>}, {transform_indices = @transform_2, window_bounds = array<i64: 1, 16, 128>}, {transform_indices = @transform_3, window_bounds = array<i64: 1, 1, 128>}, {transform_indices = @transform_4, window_bounds = array<i64: 1, 1, 128>}, {transform_indices = @transform_5, window_bounds = array<i64: 1, 1, 128>}, {pipeline_mode = #tpu.pipeline_mode<synchronous>, transform_indices = @transform_6, window_bounds = array<i64: 32, 48>}, {pipeline_mode = #tpu.pipeline_mode<synchronous>, transform_indices = @transform_7, window_bounds = array<i64: 32, 1>}, {pipeline_mode = #tpu.pipeline_mode<synchronous>, transform_indices = @transform_8, window_bounds = array<i64: 3, 16, 32>}, {pipeline_mode = #tpu.pipeline_mode<synchronous>, transform_indices = @transform_9, window_bounds = array<i64: 16, 1>}, {transform_indices = @transform_10, window_bounds = array<i64: 1, 16, 128>}]} {
    %c0 = arith.constant 0 : index
    %c0_0 = arith.constant 0 : index
    %c0_1 = arith.constant 0 : index
    %0 = vector.load %arg5[%c0, %c0_0, %c0_1] : memref<1x1x128xbf16, #tpu.memory_space<vmem>>, vector<1x1x128xbf16>
    %1 = vector.shape_cast %0 : vector<1x1x128xbf16> to vector<1x128xbf16>
    %c0_2 = arith.constant 0 : index
    %c0_3 = arith.constant 0 : index
    %2 = vector.load %arg16[%c0_2, %c0_3] : memref<1x384xbf16, #tpu.memory_space<vmem>>, vector<1x128xbf16>
    tpu.vector_store %arg16[%c0_2, %c0_3], %1 {strides = array<i32>} : memref<1x384xbf16, #tpu.memory_space<vmem>>, vector<1x128xbf16>,
    %c0_4 = arith.constant 0 : index
    %c0_5 = arith.constant 0 : index
    %c0_6 = arith.constant 0 : index
    %3 = vector.load %arg6[%c0_4, %c0_5, %c0_6] : memref<1x1x128xbf16, #tpu.memory_space<vmem>>, vector<1x1x128xbf16>
    %4 = vector.shape_cast %3 : vector<1x1x128xbf16> to vector<1x128xbf16>
    %c0_7 = arith.constant 0 : index
    %c128 = arith.constant 128 : index
    %5 = vector.load %arg16[%c0_7, %c128] : memref<1x384xbf16, #tpu.memory_space<vmem>>, vector<1x128xbf16>
    tpu.vector_store %arg16[%c0_7, %c128], %4 {strides = array<i32>} : memref<1x384xbf16, #tpu.memory_space<vmem>>, vector<1x128xbf16>,
    %c0_8 = arith.constant 0 : index
    %c0_9 = arith.constant 0 : index
    %c0_10 = arith.constant 0 : index
    %6 = vector.load %arg7[%c0_8, %c0_9, %c0_10] : memref<1x1x128xbf16, #tpu.memory_space<vmem>>, vector<1x1x128xbf16>
    %7 = vector.shape_cast %6 : vector<1x1x128xbf16> to vector<1x128xbf16>
    %c0_11 = arith.constant 0 : index
    %c256 = arith.constant 256 : index
    %8 = vector.load %arg16[%c0_11, %c256] : memref<1x384xbf16, #tpu.memory_space<vmem>>, vector<1x128xbf16>
    tpu.vector_store %arg16[%c0_11, %c256], %7 {strides = array<i32>} : memref<1x384xbf16, #tpu.memory_space<vmem>>, vector<1x128xbf16>,
    %c0_12 = arith.constant 0 : index
    %c0_13 = arith.constant 0 : index
    %c0_14 = arith.constant 0 : index
    %9 = vector.load %arg2[%c0_12, %c0_13, %c0_14] : memref<1x16x128xbf16, #tpu.memory_space<vmem>>, vector<1x16x128xbf16>
    %10 = vector.shape_cast %9 : vector<1x16x128xbf16> to vector<16x128xbf16>
    %c0_15 = arith.constant 0 : index
    %c0_16 = arith.constant 0 : index
    %c0_17 = arith.constant 0 : index
    %11 = vector.load %arg5[%c0_15, %c0_16, %c0_17] : memref<1x1x128xbf16, #tpu.memory_space<vmem>>, vector<1x1x128xbf16>
    %12 = vector.shape_cast %11 : vector<1x1x128xbf16> to vector<1x128xbf16>
    %13 = vector.broadcast %12 : vector<1x128xbf16> to vector<16x128xbf16>
    %14 = arith.mulf %10, %13 : vector<16x128xbf16>
    %c0_18 = arith.constant 0 : index
    %c0_19 = arith.constant 0 : index
    %15 = vector.load %arg13[%c0_18, %c0_19] : memref<16x384xbf16, #tpu.memory_space<vmem>>, vector<16x128xbf16>
    tpu.vector_store %arg13[%c0_18, %c0_19], %14 {strides = array<i32>} : memref<16x384xbf16, #tpu.memory_space<vmem>>, vector<16x128xbf16>,
    %c0_20 = arith.constant 0 : index
    %c0_21 = arith.constant 0 : index
    %c0_22 = arith.constant 0 : index
    %16 = vector.load %arg3[%c0_20, %c0_21, %c0_22] : memref<1x16x128xbf16, #tpu.memory_space<vmem>>, vector<1x16x128xbf16>
    %17 = vector.shape_cast %16 : vector<1x16x128xbf16> to vector<16x128xbf16>
    %c0_23 = arith.constant 0 : index
    %c0_24 = arith.constant 0 : index
    %c0_25 = arith.constant 0 : index
    %18 = vector.load %arg6[%c0_23, %c0_24, %c0_25] : memref<1x1x128xbf16, #tpu.memory_space<vmem>>, vector<1x1x128xbf16>
    %19 = vector.shape_cast %18 : vector<1x1x128xbf16> to vector<1x128xbf16>
    %20 = vector.broadcast %19 : vector<1x128xbf16> to vector<16x128xbf16>
    %21 = arith.mulf %17, %20 : vector<16x128xbf16>
    %c0_26 = arith.constant 0 : index
    %c128_27 = arith.constant 128 : index
    %22 = vector.load %arg13[%c0_26, %c128_27] : memref<16x384xbf16, #tpu.memory_space<vmem>>, vector<16x128xbf16>
    tpu.vector_store %arg13[%c0_26, %c128_27], %21 {strides = array<i32>} : memref<16x384xbf16, #tpu.memory_space<vmem>>, vector<16x128xbf16>,
    %c0_28 = arith.constant 0 : index
    %c0_29 = arith.constant 0 : index
    %c0_30 = arith.constant 0 : index
    %23 = vector.load %arg4[%c0_28, %c0_29, %c0_30] : memref<1x16x128xbf16, #tpu.memory_space<vmem>>, vector<1x16x128xbf16>
    %24 = vector.shape_cast %23 : vector<1x16x128xbf16> to vector<16x128xbf16>
    %c0_31 = arith.constant 0 : index
    %c0_32 = arith.constant 0 : index
    %c0_33 = arith.constant 0 : index
    %25 = vector.load %arg7[%c0_31, %c0_32, %c0_33] : memref<1x1x128xbf16, #tpu.memory_space<vmem>>, vector<1x1x128xbf16>
    %26 = vector.shape_cast %25 : vector<1x1x128xbf16> to vector<1x128xbf16>
    %27 = vector.broadcast %26 : vector<1x128xbf16> to vector<16x128xbf16>
    %28 = arith.mulf %24, %27 : vector<16x128xbf16>
    %c0_34 = arith.constant 0 : index
    %c256_35 = arith.constant 256 : index
    %29 = vector.load %arg13[%c0_34, %c256_35] : memref<16x384xbf16, #tpu.memory_space<vmem>>, vector<16x128xbf16>
    tpu.vector_store %arg13[%c0_34, %c256_35], %28 {strides = array<i32>} : memref<16x384xbf16, #tpu.memory_space<vmem>>, vector<16x128xbf16>,
    %c0_36 = arith.constant 0 : index
    %c126 = arith.constant 126 : index
    %30 = vector.load %arg13[%c0_36, %c126] : memref<16x384xbf16, #tpu.memory_space<vmem>>, vector<16x256xbf16>
    %c0_37 = arith.constant 0 : index
    %c0_38 = arith.constant 0 : index
    %31 = vector.load %arg14[%c0_37, %c0_38] : memref<48x256xbf16, #tpu.memory_space<vmem>>, vector<16x256xbf16>
    tpu.vector_store %arg14[%c0_37, %c0_38], %30 {strides = array<i32>} : memref<48x256xbf16, #tpu.memory_space<vmem>>, vector<16x256xbf16>,
    %c0_39 = arith.constant 0 : index
    %c127 = arith.constant 127 : index
    %32 = vector.load %arg13[%c0_39, %c127] : memref<16x384xbf16, #tpu.memory_space<vmem>>, vector<16x256xbf16>
    %c16 = arith.constant 16 : index
    %c0_40 = arith.constant 0 : index
    %33 = vector.load %arg14[%c16, %c0_40] : memref<48x256xbf16, #tpu.memory_space<vmem>>, vector<16x256xbf16>
    tpu.vector_store %arg14[%c16, %c0_40], %32 {strides = array<i32>} : memref<48x256xbf16, #tpu.memory_space<vmem>>, vector<16x256xbf16>,
    %c0_41 = arith.constant 0 : index
    %c128_42 = arith.constant 128 : index
    %34 = vector.load %arg13[%c0_41, %c128_42] : memref<16x384xbf16, #tpu.memory_space<vmem>>, vector<16x256xbf16>
    %c32 = arith.constant 32 : index
    %c0_43 = arith.constant 0 : index
    %35 = vector.load %arg14[%c32, %c0_43] : memref<48x256xbf16, #tpu.memory_space<vmem>>, vector<16x256xbf16>
    tpu.vector_store %arg14[%c32, %c0_43], %34 {strides = array<i32>} : memref<48x256xbf16, #tpu.memory_space<vmem>>, vector<16x256xbf16>,
    %c0_44 = arith.constant 0 : index
    %c0_45 = arith.constant 0 : index
    %36 = vector.load %arg8[%c0_44, %c0_45] : memref<32x48xbf16, #tpu.memory_space<vmem>>, vector<32x48xbf16>
    %c0_46 = arith.constant 0 : index
    %c0_47 = arith.constant 0 : index
    %37 = vector.load %arg14[%c0_46, %c0_47] : memref<48x256xbf16, #tpu.memory_space<vmem>>, vector<48x256xbf16>
    %cst = arith.constant dense<0.000000e+00> : vector<32x256xf32>
    %38 = tpu.matmul %36, %37, %cst {dimension_numbers = #tpu.dot_dimension_numbers<[1], [0], [0], [1], [0, 0, 1, 1], [], []>} : vector<32x48xbf16>, vector<48x256xbf16>, vector<32x256xf32> -> vector<32x256xf32>
    %c0_48 = arith.constant 0 : index
    %c0_49 = arith.constant 0 : index
    %39 = vector.load %arg9[%c0_48, %c0_49] : memref<32x1xf32, #tpu.memory_space<vmem>>, vector<32x1xf32>
    %40 = vector.broadcast %39 : vector<32x1xf32> to vector<32x256xf32>
    %41 = arith.addf %38, %40 : vector<32x256xf32>
    %cst_50 = arith.constant 0.000000e+00 : f32
    %42 = vector.broadcast %cst_50 : f32 to vector<32x256xf32>
    %43 = arith.maximumf %41, %42 : vector<32x256xf32>
    %c0_51 = arith.constant 0 : index
    %c127_52 = arith.constant 127 : index
    %44 = vector.load %arg16[%c0_51, %c127_52] : memref<1x384xbf16, #tpu.memory_space<vmem>>, vector<1x256xbf16>
    %45 = arith.extf %44 : vector<1x256xbf16> to vector<1x256xf32>
    %46 = vector.broadcast %45 : vector<1x256xf32> to vector<32x256xf32>
    %47 = arith.mulf %43, %46 : vector<32x256xf32>
    %48 = arith.truncf %47 : vector<32x256xf32> to vector<32x256xbf16>
    %c0_53 = arith.constant 0 : index
    %c0_54 = arith.constant 0 : index
    %49 = vector.load %arg15[%c0_53, %c0_54] : memref<32x256xbf16, #tpu.memory_space<vmem>>, vector<32x256xbf16>
    tpu.vector_store %arg15[%c0_53, %c0_54], %48 {strides = array<i32>} : memref<32x256xbf16, #tpu.memory_space<vmem>>, vector<32x256xbf16>,
    %c0_55 = arith.constant 0 : index
    %c0_56 = arith.constant 0 : index
    %c0_57 = arith.constant 0 : index
    %50 = vector.load %arg10[%c0_55, %c0_56, %c0_57] : memref<3x16x32xbf16, #tpu.memory_space<vmem>>, vector<1x16x32xbf16>
    %51 = vector.shape_cast %50 : vector<1x16x32xbf16> to vector<16x32xbf16>
    %c0_58 = arith.constant 0 : index
    %c0_59 = arith.constant 0 : index
    %52 = vector.load %arg15[%c0_58, %c0_59] : memref<32x256xbf16, #tpu.memory_space<vmem>>, vector<32x128xbf16>
    %cst_60 = arith.constant dense<0.000000e+00> : vector<16x128xf32>
    %53 = tpu.matmul %51, %52, %cst_60 {dimension_numbers = #tpu.dot_dimension_numbers<[1], [0], [0], [1], [0, 0, 1, 1], [], []>} : vector<16x32xbf16>, vector<32x128xbf16>, vector<16x128xf32> -> vector<16x128xf32>
    %c1 = arith.constant 1 : index
    %c0_61 = arith.constant 0 : index
    %c0_62 = arith.constant 0 : index
    %54 = vector.load %arg10[%c1, %c0_61, %c0_62] : memref<3x16x32xbf16, #tpu.memory_space<vmem>>, vector<1x16x32xbf16>
    %55 = vector.shape_cast %54 : vector<1x16x32xbf16> to vector<16x32xbf16>
    %c0_63 = arith.constant 0 : index
    %c1_64 = arith.constant 1 : index
    %56 = vector.load %arg15[%c0_63, %c1_64] : memref<32x256xbf16, #tpu.memory_space<vmem>>, vector<32x128xbf16>
    %cst_65 = arith.constant dense<0.000000e+00> : vector<16x128xf32>
    %57 = tpu.matmul %55, %56, %cst_65 {dimension_numbers = #tpu.dot_dimension_numbers<[1], [0], [0], [1], [0, 0, 1, 1], [], []>} : vector<16x32xbf16>, vector<32x128xbf16>, vector<16x128xf32> -> vector<16x128xf32>
    %58 = arith.addf %53, %57 : vector<16x128xf32>
    %c2 = arith.constant 2 : index
    %c0_66 = arith.constant 0 : index
    %c0_67 = arith.constant 0 : index
    %59 = vector.load %arg10[%c2, %c0_66, %c0_67] : memref<3x16x32xbf16, #tpu.memory_space<vmem>>, vector<1x16x32xbf16>
    %60 = vector.shape_cast %59 : vector<1x16x32xbf16> to vector<16x32xbf16>
    %c0_68 = arith.constant 0 : index
    %c2_69 = arith.constant 2 : index
    %61 = vector.load %arg15[%c0_68, %c2_69] : memref<32x256xbf16, #tpu.memory_space<vmem>>, vector<32x128xbf16>
    %cst_70 = arith.constant dense<0.000000e+00> : vector<16x128xf32>
    %62 = tpu.matmul %60, %61, %cst_70 {dimension_numbers = #tpu.dot_dimension_numbers<[1], [0], [0], [1], [0, 0, 1, 1], [], []>} : vector<16x32xbf16>, vector<32x128xbf16>, vector<16x128xf32> -> vector<16x128xf32>
    %63 = arith.addf %58, %62 : vector<16x128xf32>
    %c0_71 = arith.constant 0 : index
    %c0_72 = arith.constant 0 : index
    %64 = vector.load %arg11[%c0_71, %c0_72] : memref<16x1xf32, #tpu.memory_space<vmem>>, vector<16x1xf32>
    %65 = vector.broadcast %64 : vector<16x1xf32> to vector<16x128xf32>
    %66 = arith.addf %63, %65 : vector<16x128xf32>
    %c0_73 = arith.constant 0 : index
    %c128_74 = arith.constant 128 : index
    %67 = vector.load %arg16[%c0_73, %c128_74] : memref<1x384xbf16, #tpu.memory_space<vmem>>, vector<1x128xbf16>
    %68 = arith.extf %67 : vector<1x128xbf16> to vector<1x128xf32>
    %69 = vector.broadcast %68 : vector<1x128xf32> to vector<16x128xf32>
    %70 = arith.mulf %66, %69 : vector<16x128xf32>
    %c0_75 = arith.constant 0 : index
    %c0_76 = arith.constant 0 : index
    %c0_77 = arith.constant 0 : index
    %71 = vector.load %arg12[%c0_75, %c0_76, %c0_77] : memref<1x16x128xf32, #tpu.memory_space<vmem>>, vector<1x16x128xf32>
    %72 = vector.shape_cast %71 : vector<1x16x128xf32> to vector<16x128xf32>
    %73 = vector.shape_cast %70 : vector<16x128xf32> to vector<1x16x128xf32>
    tpu.vector_store %arg12[%c0_75, %c0_76, %c0_77], %73 {strides = array<i32>} : memref<1x16x128xf32, #tpu.memory_space<vmem>>, vector<1x16x128xf32>,
    return
  }
  func.func @transform_0(%arg0: i32, %arg1: i32) -> (i32, i32, i32) {
    %c1_i32 = arith.constant 1 : i32
    %0 = arith.addi %arg1, %c1_i32 : i32
    %c1_i32_0 = arith.constant 1 : i32
    %1 = arith.muli %0, %c1_i32_0 : i32
    %c1_i32_1 = arith.constant 1 : i32
    %2 = arith.subi %1, %c1_i32_1 : i32
    %c0_i32 = arith.constant 0 : i32
    %c0_i32_2 = arith.constant 0 : i32
    return %arg0, %c0_i32, %2 : i32, i32, i32
  }
  func.func @transform_1(%arg0: i32, %arg1: i32) -> (i32, i32, i32) {
    %c1_i32 = arith.constant 1 : i32
    %0 = arith.addi %arg1, %c1_i32 : i32
    %c0_i32 = arith.constant 0 : i32
    %c0_i32_0 = arith.constant 0 : i32
    return %arg0, %c0_i32, %0 : i32, i32, i32
  }
  func.func @transform_2(%arg0: i32, %arg1: i32) -> (i32, i32, i32) {
    %c2_i32 = arith.constant 2 : i32
    %0 = arith.addi %arg1, %c2_i32 : i32
    %c1_i32 = arith.constant 1 : i32
    %1 = arith.muli %0, %c1_i32 : i32
    %c0_i32 = arith.constant 0 : i32
    %c0_i32_0 = arith.constant 0 : i32
    return %arg0, %c0_i32, %1 : i32, i32, i32
  }
  func.func @transform_3(%arg0: i32, %arg1: i32) -> (i32, i32, i32) {
    %c1_i32 = arith.constant 1 : i32
    %0 = arith.addi %arg1, %c1_i32 : i32
    %c1_i32_0 = arith.constant 1 : i32
    %1 = arith.muli %0, %c1_i32_0 : i32
    %c1_i32_1 = arith.constant 1 : i32
    %2 = arith.subi %1, %c1_i32_1 : i32
    %c0_i32 = arith.constant 0 : i32
    %c0_i32_2 = arith.constant 0 : i32
    return %arg0, %c0_i32, %2 : i32, i32, i32
  }
  func.func @transform_4(%arg0: i32, %arg1: i32) -> (i32, i32, i32) {
    %c1_i32 = arith.constant 1 : i32
    %0 = arith.addi %arg1, %c1_i32 : i32
    %c0_i32 = arith.constant 0 : i32
    %c0_i32_0 = arith.constant 0 : i32
    return %arg0, %c0_i32, %0 : i32, i32, i32
  }
  func.func @transform_5(%arg0: i32, %arg1: i32) -> (i32, i32, i32) {
    %c2_i32 = arith.constant 2 : i32
    %0 = arith.addi %arg1, %c2_i32 : i32
    %c1_i32 = arith.constant 1 : i32
    %1 = arith.muli %0, %c1_i32 : i32
    %c0_i32 = arith.constant 0 : i32
    %c0_i32_0 = arith.constant 0 : i32
    return %arg0, %c0_i32, %1 : i32, i32, i32
  }
  func.func @transform_6(%arg0: i32, %arg1: i32) -> (i32, i32) {
    %c0_i32 = arith.constant 0 : i32
    %c0_i32_0 = arith.constant 0 : i32
    %c0_i32_1 = arith.constant 0 : i32
    return %c0_i32, %c0_i32_0 : i32, i32
  }
  func.func @transform_7(%arg0: i32, %arg1: i32) -> (i32, i32) {
    %c0_i32 = arith.constant 0 : i32
    %c0_i32_0 = arith.constant 0 : i32
    %c0_i32_1 = arith.constant 0 : i32
    return %c0_i32, %c0_i32_0 : i32, i32
  }
  func.func @transform_8(%arg0: i32, %arg1: i32) -> (i32, i32, i32) {
    %c0_i32 = arith.constant 0 : i32
    %c0_i32_0 = arith.constant 0 : i32
    %c0_i32_1 = arith.constant 0 : i32
    %c0_i32_2 = arith.constant 0 : i32
    return %c0_i32, %c0_i32_0, %c0_i32_1 : i32, i32, i32
  }
  func.func @transform_9(%arg0: i32, %arg1: i32) -> (i32, i32) {
    %c0_i32 = arith.constant 0 : i32
    %c0_i32_0 = arith.constant 0 : i32
    %c0_i32_1 = arith.constant 0 : i32
    return %c0_i32, %c0_i32_0 : i32, i32
  }
  func.func @transform_10(%arg0: i32, %arg1: i32) -> (i32, i32, i32) {
    %c0_i32 = arith.constant 0 : i32
    %c0_i32_0 = arith.constant 0 : i32
    return %arg0, %c0_i32, %arg1 : i32, i32, i32
  }
}

</mosaic_0001>

<bundles_post_ra>
// kernel: tpu_custom_call.1
= control target key start
LH: loop header
LB: loop body
LE: loop exit
PB: predicated region body
PF: predicated region fallthrough
CT: control target
= control target key end

     0   :  { %s2239_s0 = inlined_call_operand.hbm [shape: bf16[2,16,640], index: 0, kind: input, shape index: {}]   ;;  %s2240_s1 = inlined_call_operand.hbm [shape: bf16[2,16,640], index: 1, kind: input, shape index: {}]   ;;  %s2241_s2 = inlined_call_operand.hbm [shape: bf16[2,16,640], index: 2, kind: input, shape index: {}]   ;;  %s2242_s3 = inlined_call_operand.vmem [shape: bf16[2,1,640], index: 3, kind: input, shape index: {}]   ;;  %s2243_s4 = inlined_call_operand.vmem [shape: bf16[2,1,640], index: 4, kind: input, shape index: {}]   ;;  %s2244_s5 = inlined_call_operand.vmem [shape: bf16[2,1,640], index: 5, kind: input, shape index: {}]   ;;  %s2245_s6 = inlined_call_operand.vmem [shape: bf16[32,48], index: 6, kind: input, shape index: {}]   ;;  %s2246_s7 = inlined_call_operand.vmem [shape: f32[32,1], index: 7, kind: input, shape index: {}]   ;;  %s2247_s8 = inlined_call_operand.vmem [shape: bf16[3,16,32], index: 8, kind: input, shape index: {}]   ;;  %s2248_s9 = inlined_call_operand.vmem [shape: f32[16,1], index: 9, kind: input, shape index: {}]   ;;  %s2249_s10 = inlined_call_operand.hbm [shape: f32[2,16,384], index: 10, kind: output, shape index: {}]  }
   0x1   :  { %2270 = sst [smem:[#allocation28_spill]] %s2240_s1 }
   0x2   :  { %2271 = sst [smem:[#allocation29_spill]] %s2242_s3 }
   0x3   :  { %2272 = sst [smem:[#allocation30_spill]] %s2243_s4 }
   0x4   :  { %2273 = sst [smem:[#allocation31_spill]] %s2244_s5 }
   0x5   :  { %2274 = sst [smem:[#allocation32_spill]] %s2245_s6 }
   0x6   :  { %2275 = sst [smem:[#allocation33_spill]] %s2246_s7 }
   0x7   :  { %2276 = sst [smem:[#allocation34_spill]] %s2247_s8 }
   0x8   :  { %2277 = sst [smem:[#allocation35_spill]] %s2248_s9 }
   0x9   :  { %2278 = sst [smem:[#allocation36_spill]] %s2249_s10 }
   0xa   :  { %15 = vsyncpa [#allocation7], 0 }
   0xb   :  { %17 = vsyncpa [#allocation7 + $0x1], 0 }
   0xc   :  { %18 = vsyncpa [#allocation10], 0 }
   0xd   :  { %20 = vsyncpa [#allocation10 + $0x1], 0 }
   0xe   :  { %21 = vsyncpa [#allocation8], 0 }
   0xf   :  { %23 = vsyncpa [#allocation8 + $0x1], 0  ;;  %s1842_s13 = smov 0   ;;  %s1844_s14 = smov 0  }
  0x10   :  { %s1846_s15 = smov 0   ;;  %s1848_s16 = smov 0  }
  0x11   :  { %s1850_s17 = smov 0   ;;  %s1852_s18 = smov 0  }
  0x12   :  { %s1854_s19 = smov 0   ;;  %s1856_s20 = smov 0  }
  0x13   :  { %s1858_s21 = smov 0   ;;  %s1860_s22 = smov 0  }
  0x14   :  { %s1862_s23 = smov 0   ;;  %s1864_s24 = smov 0  }
  0x15   :  { %s1866_s25 = smov 0   ;;  %s1868_s26 = smov 0  }
  0x16 LB: > { %2279 = sst [smem:[#allocation17_spill]] %s1742_s18  ;;  %s1913_s27 = sadd.s32 4294967295, %s1774_s26   ;;  %s1774_s26 = sphi %s1868_s26, %s29_s26   ;;  %s1770_s25 = sphi %s1866_s25, %s2326_s25   ;;  %s1766_s24 = sphi %s1864_s24, %s2335_s24   ;;  %s1762_s23 = sphi %s1862_s23, %s2324_s23   ;;  %s1758_s22 = sphi %s1860_s22, %s2323_s22   ;;  %s1754_s21 = sphi %s1858_s21, %s2322_s21   ;;  %s1750_s20 = sphi %s1856_s20, %s2334_s20   ;;  %s1746_s19 = sphi %s1854_s19, %s2333_s19   ;;  %s1742_s18 = sphi %s1852_s18, %s2320_s18   ;;  %s1738_s17 = sphi %s1850_s17, %s2332_s17   ;;  %s1734_s16 = sphi %s1848_s16, %s2331_s16   ;;  %s1730_s15 = sphi %s1846_s15, %s2330_s15   ;;  %s1726_s14 = sphi %s1844_s14, %s2329_s14   ;;  %s1722_s13 = sphi %s1842_s13, %s2328_s13  }
  0x17   : > { %2280 = sst [smem:[#allocation18_spill]] %s1754_s21  ;;  %s38_s28 = sadd.s32 1, %s1766_s24 }
  0x18   : > { %2281 = sst [smem:[#allocation19_spill]] %s1758_s22  ;;  %p39_p0 = scmp.ge.s32.totalorder %s38_s28, 3 }
  0x19   : > { %2282 = sst [smem:[#allocation20_spill]] %s1762_s23  ;;  %s41_s29 = sadd.s32 1, %s1770_s25 }
  0x1a   : > { %2283 = sst [smem:[#allocation21_spill]] %s1766_s24  ;;  %p58_p1 = scmp.eq.s32.totalorder %s1774_s26, 0 }
  0x1b   : > { %2284 = sst [smem:[#allocation22_spill]] %s1770_s25  ;;  %p64_p2 = scmp.eq.s32.totalorder %s1913_s27, 0 }
  0x1c   : > { %s1919_s30 = scalar_select %p39_p0, 0, %s38_s28  }
  0x1d   : > { %s2337_s29 = smov (!%p39_p0, %s41_s29), %s1770_s25  ;;  %s80_s8 = sadd.s32 1, %s1742_s18 }
  0x1e   : > { %2285 = sst [smem:[#allocation23_spill]] %s1919_s30  ;;  %s46_s11 = ssub.s32 %s1766_s24, %s1919_s30 }
  0x1f   : > { %s74_s12 = sadd.s32 1, %s1919_s30  ;;  %p43_p3 = scmp.ge.s32.totalorder %s2337_s29, 2 }
  0x20   : > { %s76_s10 = ssub.s32 %s38_s28, %s74_s12  ;;  %p87_p4 = scmp.ne.s32.totalorder %s1742_s18, %s1738_s17 }
  0x21   : > { %s2339_s29 = smov (%p43_p3, %s2337_s29), 0  ;;  %p93_p6 = scmp.ne.s32.totalorder %s1738_s17, %s1734_s16 }
  0x22   : > { %2286 = sst [smem:[#allocation24_spill]] %s2339_s29  ;;  %p1932_p5 = por %p87_p4, %p58_p1 }
  0x23   : > { %s45_s6 = ssub.s32 %s1770_s25, %s2339_s29  ;;  %s103_s7 = sadd.s32 2, %s1766_s24 }
  0x24   : > { %s1941_s5 = sor.u32 %s46_s11, %s45_s6  ;;  %s77_s28 = sor.u32 %s76_s10, %s45_s6 }
  0x25   : > { %p48_p7 = scmp.eq.s32.totalorder %s1941_s5, 0  ;;  %p78_p8 = scmp.eq.s32.totalorder %s77_s28, 0 }
  0x26   : > { %p1946_p9 = por %p93_p6, %p64_p2  ;;  %s104_s4 = sadd.s32 2, %s1919_s30 }
  0x27   : > { %s1952_s3 = scalar_select %p78_p8, %s1742_s18, %s80_s8  }
  0x28   : > { %s106_s22 = ssub.s32 %s103_s7, %s104_s4  ;;  %p1397_p10 = scmp.lt.s32.totalorder %s1774_s26, 6 }
  0x29   : > { %2289 = sst [smem:[#allocation25_spill]] %s1952_s3  ;;  %s107_s16 = sor.u32 %s106_s22, %s45_s6 }
  0x2a   : > { %p1955_p11 = scmp.eq.s32.totalorder %s107_s16, 0  ;;  %s1372_s10 = smul.u32 10, %s1770_s25 }
  0x2b   : > { %s382_s23 = sand.u32 1, %s1774_s26   ;;  %s384_s30 = sand.u32 1, %s1742_s18  }
  0x2c   : > { %s367_s28 = sadd.s32 %s1766_s24, %s1372_s10  ;;  %s1251_s8 = sshll.u32 %s384_s30, 3 }
  0x2d   : > { %s1961_s29 = sshll.u32 %s367_s28, 2  ;;  %s2291_s1 = sld [smem:[#allocation28_spill]] }
  0x2e   : > { %s386_s16 = scalar_lea.vmem [#allocation9], %s1251_s8  ;;  %p1387_p12 = pnand %p1397_p10, %p1932_p5 }
  0x2f   : > { %s396_s10 = sshll.u32 %s386_s16, 4  ;;  %p1255_p13 = scmp.ge.s32.totalorder %s1774_s26, 1  ;;  %s397_s10 = int_to_ptr.vmem [resolvable:$true] %s396_s10 }
  0x30   : > { %p462_p0 = scmp.lt.s32.totalorder %s1774_s26, 7  ;;  %s1975_s3 = scalar_lea.sflag [#allocation10], %s382_s23 }
  0x31   : > { %s2259_s30 = smov 320   ;;  %s2261_s28 = smov 64  }
  0x32   : > { %s2263_s8 = smov 4   ;;  %p1981_p3 = pnand %p1255_p13, %p462_p0 }
  0x33   : > { %s1106_s6 = scalar_lea.hbm %s2291_s1, %s1961_s29  ;;  %s1246_s4 = sadd.s32 4294967294, %s1774_s26  }
  0x34   : > { %s1107_s7 = scalar_lea.hbm %s1106_s6, 4  ;;  %s50_s6 = sadd.s32 1, %s1754_s21 }
  0x35   : > { %s394_s22 = sshll.u32 %s1107_s7, 4  ;;  %p57_p4 = scmp.ne.s32.totalorder %s1754_s21, %s1750_s20  ;;  %s395_s22 = int_to_ptr.hbm [resolvable:$true] %s394_s22 }
  0x36   : > { %1389 = dma.hbm_to_vmem [thread:$0]  (!%p1387_p12), %s395_s22, 128, %s397_s10, %s1975_s3, %s2259_s30, %s2261_s28, %s2263_s8  }
  0x37   : > { %s1992_s7 = scalar_select %p48_p7, %s1754_s21, %s50_s6  }
  0x38   : > { %p1996_p5 = por %p58_p1, %p57_p4  ;;  %p63_p6 = scmp.ne.s32.totalorder %s1750_s20, %s1746_s19 }
  0x39   : > { %2293 = sst [smem:[#allocation26_spill]] %s1992_s7  ;;  %p321_p8 = scmp.eq.s32.totalorder %s1913_s27, 5 }
  0x3a   : > { %p327_p12 = scmp.eq.s32.totalorder %s1246_s4, 5  ;;  %p2005_p13 = por %p64_p2, %p63_p6 }
  0x3b   : > { %s359_s5 = sand.u32 1, %s1754_s21   ;;  %p2010_p7 = por %p321_p8, %p57_p4 }
  0x3c   : > { %p2014_p0 = por %p327_p12, %p63_p6  ;;  %s1249_s4 = sshll.u32 %s359_s5, 3 }
  0x3d   : > { %s369_s28 = scalar_lea.hbm %s2239_s0, %s1961_s29  ;;  %s363_s1 = scalar_lea.vmem [#allocation6], %s1249_s4 }
  0x3e   : > { %s2297_s10 = scalar_select %p2014_p0, 1, 0 }
  0x3f   : > { %s370_s8 = sshll.u32 %s369_s28, 4  ;;  %s372_s25 = sshll.u32 %s363_s1, 4  ;;  %s371_s8 = int_to_ptr.hbm [resolvable:$true] %s370_s8  ;;  %s373_s25 = int_to_ptr.vmem [resolvable:$true] %s372_s25 }
  0x40   : > { %2298 = sst [smem:[#allocation27_spill]] %s2297_s10  ;;  %p1384_p4 = pnand %p1397_p10, %p1996_p5 }
  0x41   : > { %s360_s24 = scalar_lea.sflag [#allocation7], %s359_s5  ;;  %s2299_s7 = smov 4  }
  0x42   : > { %s2300_s21 = smov 64   ;;  %s2301_s18 = smov 320  }
  0x43   : > { %1386 = dma.hbm_to_vmem [thread:$0]  (!%p1384_p4), %s371_s8, 128, %s373_s25, %s360_s24, %s2301_s18, %s2300_s21, %s2299_s7  }
  0x44   : > { %s110_s10 = sadd.s32 1, %s1730_s15  ;;  %p117_p6 = scmp.ne.s32.totalorder %s1730_s15, %s1726_s14 }
  0x45   : > { %s2035_s30 = scalar_select %p1955_p11, %s1730_s15, %s110_s10  }
  0x46   : > { %p119_p8 = por %p117_p6, %p58_p1  ;;  %p123_p12 = scmp.ne.s32.totalorder %s1726_s14, %s1722_s13 }
  0x47   : > { %s408_s1 = sand.u32 1, %s1730_s15   ;;  %s1114_s4 = scalar_lea.hbm %s2241_s2, %s1961_s29 }
  0x48   : > { %p2048_p5 = por %p123_p12, %p64_p2  ;;  %s1253_s24 = sshll.u32 %s408_s1, 3 }
  0x49   : > { %s1115_s25 = scalar_lea.hbm %s1114_s4, 8  ;;  %s410_s6 = scalar_lea.vmem [#allocation11], %s1253_s24 }
  0x4a   : > { %s418_s8 = sshll.u32 %s1115_s25, 4  ;;  %s420_s11 = sshll.u32 %s410_s6, 4  ;;  %s419_s8 = int_to_ptr.hbm [resolvable:$true] %s418_s8  ;;  %s421_s11 = int_to_ptr.vmem [resolvable:$true] %s420_s11 }
  0x4b   : > { %p1390_p1 = pnand %p1397_p10, %p119_p8  ;;  %466 = sbr.rel (%p1981_p3) target bundleno = 737 (0x2e1), region = 60 }
  0x4c   : > { %s2061_s13 = sand.u32 (!%p1981_p3), 1, %s1750_s20  }
  0x4d   : > { %1392 = dma.hbm_to_vmem [thread:$0]  (!%p1390_p1), %s419_s8, 128, %s421_s11, %s1975_s3, %s2301_s18, %s2300_s21, %s2299_s7  }
  0x4e   : > { %s1256_s29 = sshll.u32 (!%p1981_p3), %s2061_s13, 3  ;;  %s469_s10 = scalar_lea.sflag (!%p1981_p3), [#allocation7], %s2061_s13 }
  0x4f   : > { %s2065_s1 = scalar_lea.vmem (!%p1981_p3), [#allocation6], %s1256_s29 }
  0x50   : > { %1705 = dma.done.wait (%p2005_p13), %s469_s10, 128  }
  0x51   : > { %1707 = vsyncadd (%p2005_p13), %s469_s10, 4294967168  ;;  %s478_s18 = sand.u32 1, %s1913_s27   ;;  %s480_s21 = sand.u32 1, %s1738_s17  }
  0x52   : > { %s2073_s3 = sshll.u32 %s480_s21, 3  ;;  %s479_s9 = scalar_lea.sflag [#allocation10], %s478_s18 }
  0x53   : > { %s482_s7 = scalar_lea.vmem [#allocation9], %s2073_s3 }
  0x54   : > { %1709 = dma.done.wait (%p1946_p9), %s479_s9, 128  }
  0x55   : > { %1711 = vsyncadd (%p1946_p9), %s479_s9, 4294967168  ;;  %s490_s28 = sand.u32 1, %s1726_s14  }
  0x56   : > { %s2081_s22 = sshll.u32 %s490_s28, 3 }
  0x57   : > { %s492_s23 = scalar_lea.vmem [#allocation11], %s2081_s22 }
  0x58   : > { %1713 = dma.done.wait (%p2048_p5), %s479_s9, 128  }
  0x59   : > { %1715 = vsyncadd (%p2048_p5), %s479_s9, 4294967168  ;;  %s2303_s27 = sld [smem:[#allocation20_spill]]  ;;  %vm592_vm0 = vcmask 1040384   ;;  %vm593_vm1 = vsmask.f32 256  ;;  %v1361_v2 = vld [vmem:[%s2065_s1] sm:$0xff]  }
  0x5a   : > { %s2304_s4 = sld [smem:[#allocation19_spill]]  ;;  %vm2094_vm2 = vmand %vm592_vm0, %vm593_vm1  ;;  %v595_v1 = vld [vmem:[#allocation5] sm:$0x1]  ;;  %v599_v7 = vld [vmem:[#allocation5 + $0x1] sm:$0x1]  ;;  %v1363_v8 = vunpack.c.h.bf16 %v1361_v2  ;;  %v1362_v11 = vunpack.c.l.bf16 %v1361_v2  ;;  %s1779_s3 = smov 1  }
  0x5b   : > { %s2307_s10 = sld [smem:[#allocation29_spill]]  ;;  %v1365_v10 = vld [vmem:[%s482_s7] sm:$0xff]   ;;  %v1369_v18 = vld [vmem:[%s492_s23] sm:$0xff]   ;;  %s1780_s7 = smov 2   ;;  %vm674_vm3 = vcmask 1043456   ;;  %vm676_vm4 = vcmask 15360  }
  0x5c   : > { %v603_v12 = vld [vmem:[#allocation5 + $0x2] sm:$0x1]  ;;  %s2309_s29 = sld [smem:[#allocation31_spill]]  ;;  %v1367_v21 = vunpack.c.h.bf16 %v1365_v10  ;;  %v1366_v27 = vunpack.c.l.bf16 %v1365_v10  ;;  %v1371_v28 = vunpack.c.h.bf16 %v1369_v18  ;;  %v1370_v30 = vunpack.c.l.bf16 %v1369_v18  ;;  %s1047_s9 = scalar_lea.sflag [#allocation8], %s2061_s13 }
  0x5d   : > { %vm705_vm5 = vcmask 7168   ;;  %vm791_vm6 = vcmask 392192   ;;  %s2313_s23 = sld [smem:[#allocation35_spill]]  ;;  %vm933_vm7 = vcmask 261120   ;;  %vm928_vm8 = vcmask 1039360  }
  0x5e   : > { %s2315_s28 = sld [smem:[#allocation34_spill]]  ;;  %vm1001_vm9 = vcmask 1031168  }
  0x5f   : > { %p565_p2 = scmp.lt.s32.totalorder %s2303_s27, 1 }
  0x60   : > { %p567_p9 = scmp.lt.s32.totalorder %s2304_s4, 4  ;;  %s572_s12 = sadd.s32 1, %s2304_s4 }
  0x61   : > { %s566_s24 = scalar_select %p565_p2, %s2303_s27, 1 }
  0x62   : > { %s568_s25 = scalar_select %p567_p9, %s2304_s4, 4 }
  0x63   : > { %s1373_s8 = smul.u32 5, %s566_s24  ;;  %p575_p10 = scmp.lt.s32.totalorder %s572_s12, 4 }
  0x64   : > { %s581_s6 = sadd.s32 2, %s2304_s4  ;;  %s2308_s24 = sld [smem:[#allocation30_spill]] }
  0x65   : > { %s570_s11 = sadd.s32 %s1373_s8, %s568_s25  ;;  %p584_p11 = scmp.lt.s32.totalorder %s581_s6, 4 }
  0x66   : > { %s571_s18 = scalar_lea.vmem %s2307_s10, %s570_s11  ;;  %s2341_s12 = smov (!%p575_p10, %s572_s12), 4 }
  0x67   : > { %v608_v3 = vld [vmem:[%s571_s18] sm:$0x1]  ;;  %s2343_s6 = smov (!%p584_p11, %s581_s6), 4  ;;  %s578_s21 = sadd.s32 %s1373_s8, %s2341_s12 }
  0x68   : > { %v591_v4 = vld [vmem:[%s571_s18] sm:$0x1]  ;;  %v610_v5 = vpack.i.b16 %v608_v3, %v608_v3  ;;  %s587_s1 = sadd.s32 %s1373_s8, %s2343_s6  ;;  %s2310_s8 = sld [smem:[#allocation33_spill]] }
  0x69   : > { %v596_v6 = vsel %vm2094_vm2, %v591_v4, %v595_v1  ;;  %s588_s12 = scalar_lea.vmem %s2309_s29, %s587_s1  ;;  %s2314_s6 = smov %s2313_s23 }
  0x6a   : > { %597 = vst [vmem:[#allocation5] sm:$0x1] %v596_v6  ;;  %s579_s25 = scalar_lea.vmem %s2308_s24, %s578_s21  ;;  %v612_v9 = vperm.slane %v610_v5, 0  ;;  %v640_v19 = vld [vmem:[%s588_s12] sm:$0x1]  ;;  %s2311_s24 = sld [smem:[#allocation32_spill]] }
  0x6b   : > { %v624_v13 = vld [vmem:[%s579_s25] sm:$0x1]  ;;  %v642_v22 = vpack.i.b16 %v640_v19, %v640_v19  ;;  %s1374_s29 = smul.u32 6, %s2303_s27  ;;  %s2316_s10 = sld [smem:[#allocation36_spill]] }
  0x6c   : > { %v598_v14 = vld [vmem:[%s579_s25] sm:$0x1]  ;;  %v615_v15 = vunpack.c.l.bf16 %v612_v9  ;;  %v626_v16 = vpack.i.b16 %v624_v13, %v624_v13 }
  0x6d   : > { %v600_v17 = vsel %vm2094_vm2, %v598_v14, %v599_v7  ;;  %v602_v20 = vld [vmem:[%s588_s12] sm:$0x1]  ;;  %v644_v29 = vperm.slane %v642_v22, 0  ;;  %s1782_s12 = smov 127  }
  0x6e   : > { %601 = vst [vmem:[#allocation5 + $0x1] sm:$0x1] %v600_v17  ;;  %v604_v23 = vsel %vm2094_vm2, %v602_v20, %v603_v12  ;;  %v617_v24 = vmul.f32 %v1363_v8, %v615_v15  ;;  %v628_v25 = vperm.slane %v626_v16, 0  ;;  %v616_v26 = vmul.f32 %v1362_v11, %v615_v15  ;;  %v727_v16 = vld [vmem:[%s2310_s8] sm:$0xff] }
  0x6f   : > { %605 = vst [vmem:[#allocation5 + $0x2] sm:$0x1] %v604_v23  ;;  %v647_v34 = vunpack.c.l.bf16 %v644_v29  ;;  %v1781_v8 = vmov 0  }
  0x70   : > { %v619_v31 = vpack.c.bf16 %v617_v24, %v617_v24  ;;  %v631_v32 = vunpack.c.l.bf16 %v628_v25  ;;  %v618_v33 = vpack.c.bf16 %v616_v26, %v616_v26  ;;  %1529 = vset.pattern.permute.xlu1 %v1781_v8  ;;  %1522 = vset.pattern.permute.xlu2 %v1781_v8  ;;  %v729_v24 = vld [vmem:[%s2310_s8 + $0x10] sm:$0xff]  ;;  %v730_v25 = vld [vmem:[%s2310_s8 + $0x18] sm:$0xff]  ;;  %s2312_s1 = smov %s2311_s24 }
  0x71   : > { %v649_v37 = vmul.f32 %v1371_v28, %v647_v34  ;;  %v648_v38 = vmul.f32 %v1370_v30, %v647_v34  ;;  %1523 = vset.pattern.permute.xlu0 %v1781_v8 }
  0x72   : > { %621 = vst [vmem:[#allocation2 + $0xc] sm:$0xf] %v619_v31  ;;  %v633_v35 = vmul.f32 %v1367_v21, %v631_v32  ;;  %v632_v36 = vmul.f32 %v1366_v27, %v631_v32 }
  0x73   : > { %620 = vst [vmem:[#allocation2] sm:$0xf] %v618_v33  ;;  %v651_v41 = vpack.c.bf16 %v649_v37, %v649_v37  ;;  %v650_v42 = vpack.c.bf16 %v648_v38, %v648_v38 }
  0x74   : > { %v635_v39 = vpack.c.bf16 %v633_v35, %v633_v35  ;;  %v634_v40 = vpack.c.bf16 %v632_v36, %v632_v36 }
  0x75   : > { %653 = vst [vmem:[#allocation2 + $0x14] sm:$0xf] %v651_v41 }
  0x76   : > { %637 = vst [vmem:[#allocation2 + $0x10] sm:$0xf] %v635_v39  ;;  %v844_v63 = vld [vmem:[#allocation5] sm:$0x7] }
  0x77   : > { %636 = vst [vmem:[#allocation2 + $0x4] sm:$0xf] %v634_v40  ;;  %v845_v0 = vunpack.c.l.bf16 %v844_v63 }
  0x78   : > { %652 = vst [vmem:[#allocation2 + $0x8] sm:$0xf] %v650_v42  ;;  %v1343_v42 = vld [vmem:[%s2311_s24] sm:$0xff] }
  0x79   : > { %v847_v2 = vperm.slane %v845_v0, 0  ;;  %v848_v3 = vperm.slane %v845_v0, 2  ;;  %v849_v29 = vperm.slane %v845_v0, 4 }
  0x7b   : > { %v853_v5 = vperm.slane %v847_v2, 0  ;;  %v854_v6 = vperm.slane %v848_v3, 0  ;;  %v855_v35 = vperm.slane %v849_v29, 0 }
  0x7c   : > { %v687_v45 = vld [vmem:[#allocation2 + $0x14] sm:$0xf] }
  0x7d   : > { %v686_v43 = vld [vmem:[#allocation2 + $0xc] sm:$0xff]  ;;  %v657_v48 = vld [vmem:[#allocation2 + $0x14] sm:$0xf]  ;;  %v1524_v7 = vpack.i.bf16 %v854_v6, %v853_v5 }
  0x7e   : > { %696 = vrot.lane.b32.xlu1 %v686_v43, %s1779_s3  ;;  %v684_v44 = vld [vmem:[#allocation2] sm:$0xff]  ;;  %v714_v51 = vld [vmem:[#allocation2 + $0x10] sm:$0xff] }
  0x7f   : > { %692 = vrot.lane.b32.xlu0 %v684_v44, %s1779_s3  ;;  %662 = vrot.lane.b32.xlu2 %v684_v44, %s1780_s7  ;;  %v685_v46 = vld [vmem:[#allocation2 + $0x8] sm:$0xf]  ;;  %716 = vst [vmem:[#allocation3 + $0x28] sm:$0xff] %v714_v51 }
  0x80   : > { %v655_v47 = vld [vmem:[#allocation2 + $0x8] sm:$0xf] }
  0x81   : > { %v713_v50 = vld [vmem:[#allocation2 + $0x4] sm:$0xff] }
  0x82   : > { %715 = vst [vmem:[#allocation3 + $0x20] sm:$0xff] %v713_v50  ;;  %v1344_v44 = vld [vmem:[%s2312_s1 + $0x8] sm:$0xff] }
  0x86   : > { %698 = vrot.lane.b32.xlu1 %v687_v45, %s1779_s3  ;;  %v1350_v57 = vld [vmem:[#allocation3 + $0x24] sm:$0xf0]  ;;  %v1288_v58 = vld [vmem:[#allocation3 + $0x28] sm:$0xf0] }
  0x87   : > { %694 = vrot.lane.b32.xlu0 %v685_v46, %s1779_s3  ;;  %664 = vrot.lane.b32.xlu2 %v655_v47, %s1780_s7 }
  0x89   : > { %v1286_v54 = vld [vmem:[#allocation3 + $0x20] sm:$0xf]  ;;  %v1349_v55 = vld [vmem:[#allocation3 + $0x24] sm:$0xf] }
  0x8a   : > { %v1287_v59 = vor.u32 %v1350_v57, %v1286_v54  ;;  %v1291_v60 = vor.u32 %v1349_v55, %v1288_v58 }
  0x8c   : > { %803 = vmatpush.bf16.msra.mxu0 %v1287_v59  ;;  %822 = vmatpush.bf16.msra.mxu1 %v1291_v60 }
  0x8e   : > { %668 = vrot.lane.b32.xlu1 %v657_v48, %s1780_s7 }
  0x8f   : > { %666 = vrot.lane.b32.xlu0 %v686_v43, %s1780_s7  ;;  %743 = vperm.xlu2 %1522, %v729_v24   ;;  %v728_v43 = vld [vmem:[%s2310_s8 + $0x8] sm:$0xff] }
  0x96   : > { %1525 = vrot.lane.b32.xlu1 %v1524_v7, %s1779_s3 }
  0x97   : > { %748 = vperm.xlu0 %1523, %v730_v25   ;;  %863 = vrot.lane.b32.xlu2 %v855_v35, %s1779_s3  ;;  %s1783_s3 = smov 126  }
  0x9e   : > { %733 = vperm.xlu1 %1529, %v727_v16  }
  0x9f   : > { %738 = vperm.xlu2 %1522, %v728_v43  }
  0xd9   : > { %v663_v49 = vpop.permute.xlu2 %662 }
  0xda   : > { %v670_v52 = vrot.slane %v663_v49, 4 }
  0xe1   : > { %v665_v53 = vpop.permute.xlu2 %664 }
  0xe2   : > { %v671_v56 = vrot.slane %v665_v53, 4 }
  0xe4   : > { %v675_v61 = vsel %vm674_vm3, %v670_v52, %v671_v56 }
  0xe5   : > { %v677_v62 = vsel %vm676_vm4, %v663_v49, %v675_v61 }
  0xe6   : > { %682 = vst [vmem:[#allocation3] sm:$0xff] %v677_v62 }
  0xe9   : > { %v744_v45 = vpop.permute.xlu2 %743 }
  0xed   : > { %v1270_v36 = vld [vmem:[#allocation3] sm:$0xf]  ;;  %v1345_v38 = vld [vmem:[#allocation3 + $0x4] sm:$0xf] }
  0xf0   : > { %v697_v1 = vpop.permute.xlu1 %696 }
  0xf1   : > { %v693_v4 = vpop.permute.xlu0 %692  ;;  %v702_v10 = vrot.slane %v697_v1, 4  ;;  %v864_v47 = vpop.permute.xlu2 %863 }
  0xf2   : > { %v700_v13 = vrot.slane %v693_v4, 4 }
  0xf8   : > { %v699_v9 = vpop.permute.xlu1 %698 }
  0xf9   : > { %v703_v11 = vrot.slane %v699_v9, 4  ;;  %v695_v12 = vpop.permute.xlu0 %694  ;;  %v739_v61 = vpop.permute.xlu2 %738 }
  0xfa   : > { %v701_v14 = vrot.slane %v695_v12, 4 }
  0xfb   : > { %v707_v15 = vsel %vm674_vm3, %v702_v10, %v703_v11 }
  0xfc   : > { %v708_v17 = vsel %vm705_vm5, %v697_v1, %v707_v15  ;;  %v704_v18 = vsel %vm674_vm3, %v700_v13, %v701_v14 }
  0xfd   : > { %712 = vst [vmem:[#allocation3 + $0x18] sm:$0xff] %v708_v17  ;;  %v706_v19 = vsel %vm705_vm5, %v693_v4, %v704_v18 }
  0xfe   : > { %711 = vst [vmem:[#allocation3 + $0x10] sm:$0xff] %v706_v19 }
 0x100   : > { %v669_v20 = vpop.permute.xlu1 %668 }
 0x101   : > { %v673_v21 = vrot.slane %v669_v20, 4  ;;  %v667_v22 = vpop.permute.xlu0 %666 }
 0x102   : > { %v672_v23 = vrot.slane %v667_v22, 4 }
 0x104   : > { %v678_v26 = vsel %vm674_vm3, %v672_v23, %v673_v21  ;;  %v1348_v27 = vld [vmem:[#allocation3 + $0x14] sm:$0xf0]  ;;  %v1280_v28 = vld [vmem:[#allocation3 + $0x18] sm:$0xf0] }
 0x105   : > { %v679_v30 = vsel %vm676_vm4, %v667_v22, %v678_v26  ;;  %v1278_v31 = vld [vmem:[#allocation3 + $0x10] sm:$0xf]  ;;  %v1347_v32 = vld [vmem:[#allocation3 + $0x14] sm:$0xf] }
 0x106   : > { %683 = vst [vmem:[#allocation3 + $0x8] sm:$0xff] %v679_v30  ;;  %v1279_v33 = vor.u32 %v1348_v27, %v1278_v31  ;;  %v1283_v34 = vor.u32 %v1347_v32, %v1280_v28 }
 0x108   : > { %804 = vmatpush.bf16.msra.mxu0 %v1279_v33  ;;  %823 = vmatpush.bf16.msra.mxu1 %v1283_v34  ;;  %v1526_v46 = vpop.permute.xlu1 %1525 }
 0x109   : > { %v1528_v48 = vunpack.i.h.bf16 %v1526_v46  ;;  %v1527_v49 = vunpack.i.l.bf16 %v1526_v46  ;;  %v749_v16 = vpop.permute.xlu0 %748  ;;  %v1026_v46 = vld [vmem:[%s2314_s6 + $0x8] sm:$0xff] }
 0x10b   : > { %v866_v55 = vsel %vm705_vm5, %v1527_v49, %v1528_v48  ;;  %v867_v56 = vsel %vm705_vm5, %v1528_v48, %v864_v47  ;;  %v1351_v47 = vld [vmem:[%s2315_s28] sm:$0xff] }
 0x10d   : > { %v1346_v37 = vld [vmem:[#allocation3 + $0x4] sm:$0xf0]  ;;  %v1272_v39 = vld [vmem:[#allocation3 + $0x8] sm:$0xf0] }
 0x10e   : > { %v1271_v40 = vor.u32 %v1346_v37, %v1270_v36  ;;  %v1275_v41 = vor.u32 %v1345_v38, %v1272_v39 }
 0x110   : > { %805 = vmatpush.bf16.msra.mxu0 %v1271_v40  ;;  %824 = vmatpush.bf16.msra.mxu1 %v1275_v41  ;;  %v734_v50 = vpop.permute.xlu1 %733 }
 0x113   : > { %1292 = vmatmul.msk.bf16.vlgmr.msra.gmra.mxu0 %vm791_vm6, %v1343_v42  ;;  %1294 = vmatmul.msk.bf16.vlgmr.msra.gmra.mxu1 %vm791_vm6, %v1343_v42 }
 0x123   : > { %1293 = vmatmul.msk.bf16.gmra.mxu0 %vm791_vm6, %v1344_v44  ;;  %1295 = vmatmul.msk.bf16.gmra.mxu1 %vm791_vm6, %v1344_v44  ;;  %v1025_v44 = vld [vmem:[%s2313_s23] sm:$0xff] }
 0x190   : > { %v807_v51 = vpop.f32.mrf.mxu0  ;;  %v826_v52 = vpop.f32.mrf.mxu1 }
 0x191   : > { %v808_v53 = vadd.f32 %v807_v51, %v734_v50  ;;  %v827_v54 = vadd.f32 %v826_v52, %v734_v50 }
 0x193   : > { %v836_v57 = vmax.f32 %v808_v53, 0.0  ;;  %v837_v58 = vmax.f32 %v827_v54, 0.0 }
 0x195   : > { %v870_v59 = vmul.f32 %v866_v55, %v836_v57  ;;  %v871_v60 = vmul.f32 %v867_v56, %v837_v58  ;;  %v1354_v57 = vld [vmem:[%s2315_s28 + $0x8] sm:$0xff] }
 0x197   : > { %v878_v62 = vpack.c.bf16 %v871_v60, %v870_v59 }
 0x198   : > { %v809_v63 = vpop.f32.mrf.mxu0  ;;  %v828_v0 = vpop.f32.mrf.mxu1 }
 0x199   : > { %882 = vst [vmem:[#allocation4] sm:$0xff] %v878_v62  ;;  %v810_v1 = vadd.f32 %v809_v63, %v739_v61  ;;  %v829_v2 = vadd.f32 %v828_v0, %v739_v61  ;;  %v1359_v61 = vld [vmem:[%s2315_s28 + $0x10] sm:$0xff] }
 0x19b   : > { %v838_v3 = vmax.f32 %v810_v1, 0.0  ;;  %v839_v4 = vmax.f32 %v829_v2, 0.0  ;;  %v1039_v1 = vld [vmem:[#allocation5 + $0x1] sm:$0x1] }
 0x19c   : > { %v1040_v2 = vunpack.c.l.bf16 %v1039_v1 }
 0x19d   : > { %v872_v5 = vmul.f32 %v866_v55, %v838_v3  ;;  %v873_v6 = vmul.f32 %v867_v56, %v839_v4 }
 0x19f   : > { %v879_v7 = vpack.c.bf16 %v873_v6, %v872_v5  ;;  %v1041_v6 = vperm.slane %v1040_v2, 0 }
 0x1a0   : > { %v812_v8 = vpop.f32.mrf.mxu0  ;;  %v831_v9 = vpop.f32.mrf.mxu1  ;;  %v1304_v20 = vld [vmem:[#allocation4] sm:$0xf]  ;;  %v1355_v43 = vld [vmem:[#allocation4 + $0x4] sm:$0xf] }
 0x1a1   : > { %883 = vst [vmem:[#allocation4 + $0x8] sm:$0xff] %v879_v7  ;;  %v813_v10 = vadd.f32 %v812_v8, %v744_v45  ;;  %v832_v11 = vadd.f32 %v831_v9, %v744_v45  ;;  %v1325_v40 = vld [vmem:[#allocation4] sm:$0xf] }
 0x1a3   : > { %v840_v12 = vmax.f32 %v813_v10, 0.0  ;;  %v841_v13 = vmax.f32 %v832_v11, 0.0 }
 0x1a5   : > { %v874_v14 = vmul.f32 %v866_v55, %v840_v12  ;;  %v875_v15 = vmul.f32 %v867_v56, %v841_v13 }
 0x1a7   : > { %v880_v17 = vpack.c.bf16 %v875_v15, %v874_v14 }
 0x1a8   : > { %v814_v18 = vpop.f32.mrf.mxu0  ;;  %v833_v19 = vpop.f32.mrf.mxu1  ;;  %v1356_v21 = vld [vmem:[#allocation4 + $0x4] sm:$0xf0]  ;;  %v1306_v42 = vld [vmem:[#allocation4 + $0x8] sm:$0xf0] }
 0x1a9   : > { %884 = vst [vmem:[#allocation4 + $0x10] sm:$0xff] %v880_v17  ;;  %v815_v22 = vadd.f32 %v814_v18, %v749_v16  ;;  %v834_v23 = vadd.f32 %v833_v19, %v749_v16  ;;  %v1305_v24 = vor.u32 %v1356_v21, %v1304_v20  ;;  %v1352_v39 = vld [vmem:[#allocation4 + $0x4] sm:$0xf0]  ;;  %v1309_v45 = vor.u32 %v1355_v43, %v1306_v42 }
 0x1aa   : > { %v1326_v41 = vor.u32 %v1352_v39, %v1325_v40 }
 0x1ab   : > { %v842_v25 = vmax.f32 %v815_v22, 0.0  ;;  %v843_v26 = vmax.f32 %v834_v23, 0.0  ;;  %920 = vrot.lane.b32.xlu2 %v1305_v24, %s1782_s12 }
 0x1ad   : > { %v876_v27 = vmul.f32 %v866_v55, %v842_v25  ;;  %v877_v28 = vmul.f32 %v867_v56, %v843_v26 }
 0x1af   : > { %v881_v29 = vpack.c.bf16 %v877_v28, %v876_v27 }
 0x1b0   : > { %v1312_v30 = vld [vmem:[#allocation4 + $0x10] sm:$0xf]  ;;  %v1357_v31 = vld [vmem:[#allocation4 + $0x14] sm:$0xf] }
 0x1b1   : > { %885 = vst [vmem:[#allocation4 + $0x18] sm:$0xff] %v881_v29  ;;  %v1329_v32 = vld [vmem:[#allocation4 + $0x10] sm:$0xf] }
 0x1b8   : > { %v1358_v33 = vld [vmem:[#allocation4 + $0x14] sm:$0xf0]  ;;  %v1314_v34 = vld [vmem:[#allocation4 + $0x18] sm:$0xf0] }
 0x1b9   : > { %v1353_v35 = vld [vmem:[#allocation4 + $0x14] sm:$0xf0]  ;;  %v1313_v36 = vor.u32 %v1358_v33, %v1312_v30  ;;  %v1317_v37 = vor.u32 %v1357_v31, %v1314_v34 }
 0x1ba   : > { %v1330_v38 = vor.u32 %v1353_v35, %v1329_v32 }
 0x1bb   : > { %924 = vrot.lane.b32.xlu0 %v1313_v36, %s1782_s12  ;;  %926 = vrot.lane.b32.xlu1 %v1317_v37, %s1782_s12 }
 0x1bc   : > { %977 = vmatpush.bf16.msra.mxu3 %v1330_v38  ;;  %999 = vrot.lane.b32.xlu2 %v1317_v37, %s1783_s3 }
 0x1c0   : > { %978 = vmatpush.bf16.msra.mxu3 %v1326_v41 }
 0x1c3   : > { %997 = vrot.lane.b32.xlu1 %v1313_v36, %s1783_s3  ;;  %922 = vrot.lane.b32.xlu0 %v1309_v45, %s1782_s12  ;;  %s1057_s12 = sadd.s32 %s2304_s4, %s1374_s29  ;;  %s1640_s29 = scalar_lea.hbm %s2316_s10, 96 }
 0x1c4   : > { %1029 = vperm.xlu2 %1522, %v1025_v44   ;;  %1331 = vmatmul.msk.bf16.vlgmr.msra.gmra.mxu3 %vm933_vm7, %v1351_v47  ;;  %s1340_s7 = sshll.u32 %s1057_s12, 3 }
 0x1c5   : > { %s1059_s18 = scalar_lea.hbm %s2316_s10, %s1340_s7 }
 0x1c6   : > { %s1062_s4 = sshll.u32 %s1059_s18, 4  ;;  %s1063_s4 = int_to_ptr.hbm [resolvable:$true] %s1062_s4 }
 0x1c7   : > { %s1634_s24 = sshra.s32 %s1063_s4, 4  ;;  %s1635_s24 = int_to_ptr.hbm [resolvable:$true] %s1634_s24 }
 0x1c8   : > { %s1636_s25 = scalar_lea.hbm %s1635_s24, 16  ;;  %p1641_p6 = scmp.lt.s32.totalorder %s1635_s24, %s2316_s10 }
 0x1c9   : > { %p1637_p3 = scmp.ne.s32.totalorder %s1635_s24, %s1636_s25  ;;  %p1642_p8 = scmp.lt.s32.totalorder %s1640_s29, %s1636_s25 }
 0x1cb   : > { %995 = vrot.lane.b32.xlu1 %v1309_v45, %s1783_s3  ;;  %993 = vrot.lane.b32.xlu0 %v1305_v24, %s1783_s3  ;;  %s1259_s3 = sshll.u32 %s2061_s13, 4  ;;  %p1638_p13 = pnand %p1637_p3, %p2010_p7 }
 0x1cc   : > { %s562_s21 = scalar_lea.vmem [#allocation12], %s1259_s3  ;;  %p1643_p12 = por %p1642_p8, %p1641_p6 }
 0x1cd   : > { %s1060_s27 = sshll.u32 %s562_s21, 4  ;;  %p1639_p4 = pneg %p1638_p13  ;;  %s1061_s27 = int_to_ptr.vmem [resolvable:$true] %s1060_s27 }
 0x1cf   : > { %p1644_p5 = pnand %p1643_p12, %p1639_p4 }
 0x1d3   : > { %1034 = vperm.xlu0 %1523, %v1026_v46  }
 0x205   : > { %v921_v48 = vpop.permute.xlu2 %920 }
 0x216   : > { %v1000_v52 = vpop.permute.xlu2 %999 }
 0x21e   : > { %v1030_v7 = vpop.permute.xlu2 %1029 }
 0x22d   : > { %v925_v49 = vpop.permute.xlu0 %924  ;;  %v927_v50 = vpop.permute.xlu1 %926 }
 0x22e   : > { %v930_v51 = vsel %vm928_vm8, %v925_v49, %v927_v50 }
 0x22f   : > { %943 = vmatpush.bf16.msra.mxu2 %v930_v51 }
 0x235   : > { %v998_v53 = vpop.permute.xlu1 %997  ;;  %v923_v54 = vpop.permute.xlu0 %922 }
 0x236   : > { %v929_v55 = vsel %vm928_vm8, %v921_v48, %v923_v54  ;;  %v1003_v56 = vsel %vm1001_vm9, %v998_v53, %v1000_v52 }
 0x237   : > { %944 = vmatpush.bf16.msra.mxu2 %v929_v55 }
 0x23a   : > { %1318 = vmatmul.msk.bf16.vlgmr.msra.gmra.mxu2 %vm933_vm7, %v1354_v57 }
 0x23b   : > { %1015 = vmatpush.bf16.msrb.mxu2 %v1003_v56 }
 0x23d   : > { %v996_v58 = vpop.permute.xlu1 %995  ;;  %v994_v59 = vpop.permute.xlu0 %993 }
 0x23e   : > { %v1002_v60 = vsel %vm1001_vm9, %v994_v59, %v996_v58 }
 0x23f   : > { %1016 = vmatpush.bf16.msrb.mxu2 %v1002_v60 }
 0x245   : > { %v1035_v14 = vpop.permute.xlu0 %1034 }
 0x247   : > { %v980_v0 = vpop.f32.mrf.mxu3 }
 0x24a   : > { %1338 = vmatmul.msk.bf16.vlgmr.msrb.gmra.mxu2 %vm933_vm7, %v1359_v61 }
 0x24f   : > { %v982_v9 = vpop.f32.mrf.mxu3 }
 0x2bd   : > { %v946_v62 = vpop.f32.mrf.mxu2 }
 0x2be   : > { %v981_v3 = vadd.f32 %v980_v0, %v946_v62 }
 0x2c5   : > { %v948_v63 = vpop.f32.mrf.mxu2 }
 0x2c6   : > { %v983_v11 = vadd.f32 %v982_v9, %v948_v63 }
 0x2cd   : > { %v1018_v4 = vpop.f32.mrf.mxu2 }
 0x2ce   : > { %v1023_v5 = vadd.f32 %v1018_v4, %v981_v3 }
 0x2d0   : > { %v1037_v8 = vadd.f32 %v1030_v7, %v1023_v5 }
 0x2d2   : > { %v1042_v10 = vmul.f32 %v1041_v6, %v1037_v8 }
 0x2d4   : > { %1044 = vst [vmem:[%s562_s21] sm:$0xff] %v1042_v10 }
 0x2d5   : > { %v1020_v12 = vpop.f32.mrf.mxu2 }
 0x2d6   : > { %v1024_v13 = vadd.f32 %v1020_v12, %v983_v11 }
 0x2d8   : > { %v1038_v15 = vadd.f32 %v1035_v14, %v1024_v13 }
 0x2da   : > { %v1043_v16 = vmul.f32 %v1041_v6, %v1038_v15 }
 0x2dc   : > { %1045 = vst [vmem:[%s562_s21 + $0x8] sm:$0xff] %v1043_v16 }
 0x2dd   : > { %1647 = shalt.err (!%p1644_p5)
}
 0x2de   : > { %s1784_s13 = smov 128   ;;  %s1785_s7 = smov 384  }
 0x2df   : > { %s1786_s22 = smov 8  }
 0x2e0   : > { %1381 = dma.vmem_to_hbm [thread:$0]  (%p2010_p7), %s1061_s27, 256, %s1063_s4, %s1047_s9, %s1784_s13, %s1785_s7, %s1786_s22  }
 0x2e1 PF: > { %p1398_p1 = scmp.ge.s32.totalorder %s1774_s26, 2  ;;  %s1077_s18 = sand.u32 1, %s1746_s19  }
 0x2e2   : > { %s1078_s21 = scalar_lea.sflag [#allocation8], %s1077_s18 }
 0x2e3   : > { %p1394_p2 = pnand %p1398_p1, %p2014_p0 }
 0x2e5   : > { %p1395_p9 = pneg %p1394_p2 }
 0x2e7   : > { %1717 = dma.done.wait (%p1395_p9), %s1078_s21, 256  }
 0x2e8   : > { %1719 = vsyncadd (%p1395_p9), %s1078_s21, 4294967040  ;;  %s29_s26 = sadd.s32 1, %s1774_s26   ;;  %s2319_s27 = sld [smem:[#allocation17_spill]] }
 0x2e9   : > { %p2192_p10 = scmp.ge.s32.totalorder %s29_s26, 8   ;;  %s2320_s18 = sld [smem:[#allocation25_spill]] }
 0x2ea   : > { %s2321_s4 = sld [smem:[#allocation18_spill]]  ;;  %s2328_s13 = smov %s1726_s14 }
 0x2eb   : > { %s2322_s21 = sld [smem:[#allocation26_spill]]  ;;  %s2329_s14 = smov %s1730_s15 }
 0x2ec   : > { %s2323_s22 = sld [smem:[#allocation21_spill]]  ;;  %s2330_s15 = smov %s2035_s30 }
 0x2ed   : > { %s2324_s23 = sld [smem:[#allocation22_spill]]  ;;  %s2331_s16 = smov %s1738_s17 }
 0x2ee   : > { %s2325_s9 = sld [smem:[#allocation23_spill]]  ;;  %s2332_s17 = smov %s2319_s27 }
 0x2ef   : > { %s2326_s25 = sld [smem:[#allocation24_spill]]  ;;  %s2333_s19 = smov %s1750_s20 }
 0x2f0   : > { %s2334_s20 = smov %s2321_s4  ;;  %28 = sbr.rel (!%p2192_p10) target bundleno = 22 (0x16), region = 140 }
 0x2f4   : > { %s2335_s24 = smov %s2325_s9 }
 0x2f5   :  { %1084 = vsyncpa [#allocation7], 1 }
 0x2f6   :  { %1086 = vsyncpa [#allocation7 + $0x1], 1 }
 0x2f7   :  { %1087 = vsyncpa [#allocation10], 1 }
 0x2f8   :  { %1089 = vsyncpa [#allocation10 + $0x1], 1 }
 0x2f9   :  { %1090 = vsyncpa [#allocation8], 1 }
 0x2fa   :  { %1092 = vsyncpa [#allocation8 + $0x1], 1 }

// kernel: tpu_custom_call.1
= control target key start
LH: loop header
LB: loop body
LE: loop exit
PB: predicated region body
PF: predicated region fallthrough
CT: control target
= control target key end

     0   :  { %s2239_s0 = inlined_call_operand.hbm [shape: bf16[2,16,640], index: 0, kind: input, shape index: {}]   ;;  %s2240_s1 = inlined_call_operand.hbm [shape: bf16[2,16,640], index: 1, kind: input, shape index: {}]   ;;  %s2241_s2 = inlined_call_operand.hbm [shape: bf16[2,16,640], index: 2, kind: input, shape index: {}]   ;;  %s2242_s3 = inlined_call_operand.vmem [shape: bf16[2,1,640], index: 3, kind: input, shape index: {}]   ;;  %s2243_s4 = inlined_call_operand.vmem [shape: bf16[2,1,640], index: 4, kind: input, shape index: {}]   ;;  %s2244_s5 = inlined_call_operand.vmem [shape: bf16[2,1,640], index: 5, kind: input, shape index: {}]   ;;  %s2245_s6 = inlined_call_operand.vmem [shape: bf16[32,48], index: 6, kind: input, shape index: {}]   ;;  %s2246_s7 = inlined_call_operand.vmem [shape: f32[32,1], index: 7, kind: input, shape index: {}]   ;;  %s2247_s8 = inlined_call_operand.vmem [shape: bf16[3,16,32], index: 8, kind: input, shape index: {}]   ;;  %s2248_s9 = inlined_call_operand.vmem [shape: f32[16,1], index: 9, kind: input, shape index: {}]   ;;  %s2249_s10 = inlined_call_operand.hbm [shape: f32[2,16,384], index: 10, kind: output, shape index: {}]  }
   0x1   :  { %2270 = sst [smem:[#allocation28_spill]] %s2240_s1 }
   0x2   :  { %2271 = sst [smem:[#allocation29_spill]] %s2242_s3 }
   0x3   :  { %2272 = sst [smem:[#allocation30_spill]] %s2243_s4 }
   0x4   :  { %2273 = sst [smem:[#allocation31_spill]] %s2244_s5 }
   0x5   :  { %2274 = sst [smem:[#allocation32_spill]] %s2245_s6 }
   0x6   :  { %2275 = sst [smem:[#allocation33_spill]] %s2246_s7 }
   0x7   :  { %2276 = sst [smem:[#allocation34_spill]] %s2247_s8 }
   0x8   :  { %2277 = sst [smem:[#allocation35_spill]] %s2248_s9 }
   0x9   :  { %2278 = sst [smem:[#allocation36_spill]] %s2249_s10 }
   0xa   :  { %15 = vsyncpa [#allocation7], 0 }
   0xb   :  { %17 = vsyncpa [#allocation7 + $0x1], 0 }
   0xc   :  { %18 = vsyncpa [#allocation10], 0 }
   0xd   :  { %20 = vsyncpa [#allocation10 + $0x1], 0 }
   0xe   :  { %21 = vsyncpa [#allocation8], 0 }
   0xf   :  { %23 = vsyncpa [#allocation8 + $0x1], 0  ;;  %s1842_s13 = smov 0   ;;  %s1844_s14 = smov 0  }
  0x10   :  { %s1846_s15 = smov 0   ;;  %s1848_s16 = smov 0  }
  0x11   :  { %s1850_s17 = smov 0   ;;  %s1852_s18 = smov 0  }
  0x12   :  { %s1854_s19 = smov 0   ;;  %s1856_s20 = smov 0  }
  0x13   :  { %s1858_s21 = smov 0   ;;  %s1860_s22 = smov 0  }
  0x14   :  { %s1862_s23 = smov 0   ;;  %s1864_s24 = smov 0  }
  0x15   :  { %s1866_s25 = smov 0   ;;  %s1868_s26 = smov 0  }
  0x16 LB: > { %2279 = sst [smem:[#allocation17_spill]] %s1742_s18  ;;  %s1913_s27 = sadd.s32 4294967295, %s1774_s26   ;;  %s1774_s26 = sphi %s1868_s26, %s29_s26   ;;  %s1770_s25 = sphi %s1866_s25, %s2326_s25   ;;  %s1766_s24 = sphi %s1864_s24, %s2335_s24   ;;  %s1762_s23 = sphi %s1862_s23, %s2324_s23   ;;  %s1758_s22 = sphi %s1860_s22, %s2323_s22   ;;  %s1754_s21 = sphi %s1858_s21, %s2322_s21   ;;  %s1750_s20 = sphi %s1856_s20, %s2334_s20   ;;  %s1746_s19 = sphi %s1854_s19, %s2333_s19   ;;  %s1742_s18 = sphi %s1852_s18, %s2320_s18   ;;  %s1738_s17 = sphi %s1850_s17, %s2332_s17   ;;  %s1734_s16 = sphi %s1848_s16, %s2331_s16   ;;  %s1730_s15 = sphi %s1846_s15, %s2330_s15   ;;  %s1726_s14 = sphi %s1844_s14, %s2329_s14   ;;  %s1722_s13 = sphi %s1842_s13, %s2328_s13  }
  0x17   : > { %2280 = sst [smem:[#allocation18_spill]] %s1754_s21  ;;  %s38_s28 = sadd.s32 1, %s1766_s24 }
  0x18   : > { %2281 = sst [smem:[#allocation19_spill]] %s1758_s22  ;;  %p39_p0 = scmp.ge.s32.totalorder %s38_s28, 3 }
  0x19   : > { %2282 = sst [smem:[#allocation20_spill]] %s1762_s23  ;;  %s41_s29 = sadd.s32 1, %s1770_s25 }
  0x1a   : > { %2283 = sst [smem:[#allocation21_spill]] %s1766_s24  ;;  %p58_p1 = scmp.eq.s32.totalorder %s1774_s26, 0 }
  0x1b   : > { %2284 = sst [smem:[#allocation22_spill]] %s1770_s25  ;;  %p64_p2 = scmp.eq.s32.totalorder %s1913_s27, 0 }
  0x1c   : > { %s1919_s30 = scalar_select %p39_p0, 0, %s38_s28  }
  0x1d   : > { %s2337_s29 = smov (!%p39_p0, %s41_s29), %s1770_s25  ;;  %s80_s8 = sadd.s32 1, %s1742_s18 }
  0x1e   : > { %2285 = sst [smem:[#allocation23_spill]] %s1919_s30  ;;  %s46_s11 = ssub.s32 %s1766_s24, %s1919_s30 }
  0x1f   : > { %s74_s12 = sadd.s32 1, %s1919_s30  ;;  %p43_p3 = scmp.ge.s32.totalorder %s2337_s29, 2 }
  0x20   : > { %s76_s10 = ssub.s32 %s38_s28, %s74_s12  ;;  %p87_p4 = scmp.ne.s32.totalorder %s1742_s18, %s1738_s17 }
  0x21   : > { %s2339_s29 = smov (%p43_p3, %s2337_s29), 0  ;;  %p93_p6 = scmp.ne.s32.totalorder %s1738_s17, %s1734_s16 }
  0x22   : > { %2286 = sst [smem:[#allocation24_spill]] %s2339_s29  ;;  %p1932_p5 = por %p87_p4, %p58_p1 }
  0x23   : > { %s45_s6 = ssub.s32 %s1770_s25, %s2339_s29  ;;  %s103_s7 = sadd.s32 2, %s1766_s24 }
  0x24   : > { %s1941_s5 = sor.u32 %s46_s11, %s45_s6  ;;  %s77_s28 = sor.u32 %s76_s10, %s45_s6 }
  0x25   : > { %p48_p7 = scmp.eq.s32.totalorder %s1941_s5, 0  ;;  %p78_p8 = scmp.eq.s32.totalorder %s77_s28, 0 }
  0x26   : > { %p1946_p9 = por %p93_p6, %p64_p2  ;;  %s104_s4 = sadd.s32 2, %s1919_s30 }
  0x27   : > { %s1952_s3 = scalar_select %p78_p8, %s1742_s18, %s80_s8  }
  0x28   : > { %s106_s22 = ssub.s32 %s103_s7, %s104_s4  ;;  %p1397_p10 = scmp.lt.s32.totalorder %s1774_s26, 6 }
  0x29   : > { %2289 = sst [smem:[#allocation25_spill]] %s1952_s3  ;;  %s107_s16 = sor.u32 %s106_s22, %s45_s6 }
  0x2a   : > { %p1955_p11 = scmp.eq.s32.totalorder %s107_s16, 0  ;;  %s1372_s10 = smul.u32 10, %s1770_s25 }
  0x2b   : > { %s382_s23 = sand.u32 1, %s1774_s26   ;;  %s384_s30 = sand.u32 1, %s1742_s18  }
  0x2c   : > { %s367_s28 = sadd.s32 %s1766_s24, %s1372_s10  ;;  %s1251_s8 = sshll.u32 %s384_s30, 3 }
  0x2d   : > { %s1961_s29 = sshll.u32 %s367_s28, 2  ;;  %s2291_s1 = sld [smem:[#allocation28_spill]] }
  0x2e   : > { %s386_s16 = scalar_lea.vmem [#allocation9], %s1251_s8  ;;  %p1387_p12 = pnand %p1397_p10, %p1932_p5 }
  0x2f   : > { %s396_s10 = sshll.u32 %s386_s16, 4  ;;  %p1255_p13 = scmp.ge.s32.totalorder %s1774_s26, 1  ;;  %s397_s10 = int_to_ptr.vmem [resolvable:$true] %s396_s10 }
  0x30   : > { %p462_p0 = scmp.lt.s32.totalorder %s1774_s26, 7  ;;  %s1975_s3 = scalar_lea.sflag [#allocation10], %s382_s23 }
  0x31   : > { %s2259_s30 = smov 320   ;;  %s2261_s28 = smov 64  }
  0x32   : > { %s2263_s8 = smov 4   ;;  %p1981_p3 = pnand %p1255_p13, %p462_p0 }
  0x33   : > { %s1106_s6 = scalar_lea.hbm %s2291_s1, %s1961_s29  ;;  %s1246_s4 = sadd.s32 4294967294, %s1774_s26  }
  0x34   : > { %s1107_s7 = scalar_lea.hbm %s1106_s6, 4  ;;  %s50_s6 = sadd.s32 1, %s1754_s21 }
  0x35   : > { %s394_s22 = sshll.u32 %s1107_s7, 4  ;;  %p57_p4 = scmp.ne.s32.totalorder %s1754_s21, %s1750_s20  ;;  %s395_s22 = int_to_ptr.hbm [resolvable:$true] %s394_s22 }
  0x36   : > { %1389 = dma.hbm_to_vmem [thread:$0]  (!%p1387_p12), %s395_s22, 128, %s397_s10, %s1975_s3, %s2259_s30, %s2261_s28, %s2263_s8  }
  0x37   : > { %s1992_s7 = scalar_select %p48_p7, %s1754_s21, %s50_s6  }
  0x38   : > { %p1996_p5 = por %p58_p1, %p57_p4  ;;  %p63_p6 = scmp.ne.s32.totalorder %s1750_s20, %s1746_s19 }
  0x39   : > { %2293 = sst [smem:[#allocation26_spill]] %s1992_s7  ;;  %p321_p8 = scmp.eq.s32.totalorder %s1913_s27, 5 }
  0x3a   : > { %p327_p12 = scmp.eq.s32.totalorder %s1246_s4, 5  ;;  %p2005_p13 = por %p64_p2, %p63_p6 }
  0x3b   : > { %s359_s5 = sand.u32 1, %s1754_s21   ;;  %p2010_p7 = por %p321_p8, %p57_p4 }
  0x3c   : > { %p2014_p0 = por %p327_p12, %p63_p6  ;;  %s1249_s4 = sshll.u32 %s359_s5, 3 }
  0x3d   : > { %s369_s28 = scalar_lea.hbm %s2239_s0, %s1961_s29  ;;  %s363_s1 = scalar_lea.vmem [#allocation6], %s1249_s4 }
  0x3e   : > { %s2297_s10 = scalar_select %p2014_p0, 1, 0 }
  0x3f   : > { %s370_s8 = sshll.u32 %s369_s28, 4  ;;  %s372_s25 = sshll.u32 %s363_s1, 4  ;;  %s371_s8 = int_to_ptr.hbm [resolvable:$true] %s370_s8  ;;  %s373_s25 = int_to_ptr.vmem [resolvable:$true] %s372_s25 }
  0x40   : > { %2298 = sst [smem:[#allocation27_spill]] %s2297_s10  ;;  %p1384_p4 = pnand %p1397_p10, %p1996_p5 }
  0x41   : > { %s360_s24 = scalar_lea.sflag [#allocation7], %s359_s5  ;;  %s2299_s7 = smov 4  }
  0x42   : > { %s2300_s21 = smov 64   ;;  %s2301_s18 = smov 320  }
  0x43   : > { %1386 = dma.hbm_to_vmem [thread:$0]  (!%p1384_p4), %s371_s8, 128, %s373_s25, %s360_s24, %s2301_s18, %s2300_s21, %s2299_s7  }
  0x44   : > { %s110_s10 = sadd.s32 1, %s1730_s15  ;;  %p117_p6 = scmp.ne.s32.totalorder %s1730_s15, %s1726_s14 }
  0x45   : > { %s2035_s30 = scalar_select %p1955_p11, %s1730_s15, %s110_s10  }
  0x46   : > { %p119_p8 = por %p117_p6, %p58_p1  ;;  %p123_p12 = scmp.ne.s32.totalorder %s1726_s14, %s1722_s13 }
  0x47   : > { %s408_s1 = sand.u32 1, %s1730_s15   ;;  %s1114_s4 = scalar_lea.hbm %s2241_s2, %s1961_s29 }
  0x48   : > { %p2048_p5 = por %p123_p12, %p64_p2  ;;  %s1253_s24 = sshll.u32 %s408_s1, 3 }
  0x49   : > { %s1115_s25 = scalar_lea.hbm %s1114_s4, 8  ;;  %s410_s6 = scalar_lea.vmem [#allocation11], %s1253_s24 }
  0x4a   : > { %s418_s8 = sshll.u32 %s1115_s25, 4  ;;  %s420_s11 = sshll.u32 %s410_s6, 4  ;;  %s419_s8 = int_to_ptr.hbm [resolvable:$true] %s418_s8  ;;  %s421_s11 = int_to_ptr.vmem [resolvable:$true] %s420_s11 }
  0x4b   : > { %p1390_p1 = pnand %p1397_p10, %p119_p8  ;;  %466 = sbr.rel (%p1981_p3) target bundleno = 737 (0x2e1), region = 60 }
  0x4c   : > { %s2061_s13 = sand.u32 (!%p1981_p3), 1, %s1750_s20  }
  0x4d   : > { %1392 = dma.hbm_to_vmem [thread:$0]  (!%p1390_p1), %s419_s8, 128, %s421_s11, %s1975_s3, %s2301_s18, %s2300_s21, %s2299_s7  }
  0x4e   : > { %s1256_s29 = sshll.u32 (!%p1981_p3), %s2061_s13, 3  ;;  %s469_s10 = scalar_lea.sflag (!%p1981_p3), [#allocation7], %s2061_s13 }
  0x4f   : > { %s2065_s1 = scalar_lea.vmem (!%p1981_p3), [#allocation6], %s1256_s29 }
  0x50   : > { %1705 = dma.done.wait (%p2005_p13), %s469_s10, 128  }
  0x51   : > { %1707 = vsyncadd (%p2005_p13), %s469_s10, 4294967168  ;;  %s478_s18 = sand.u32 1, %s1913_s27   ;;  %s480_s21 = sand.u32 1, %s1738_s17  }
  0x52   : > { %s2073_s3 = sshll.u32 %s480_s21, 3  ;;  %s479_s9 = scalar_lea.sflag [#allocation10], %s478_s18 }
  0x53   : > { %s482_s7 = scalar_lea.vmem [#allocation9], %s2073_s3 }
  0x54   : > { %1709 = dma.done.wait (%p1946_p9), %s479_s9, 128  }
  0x55   : > { %1711 = vsyncadd (%p1946_p9), %s479_s9, 4294967168  ;;  %s490_s28 = sand.u32 1, %s1726_s14  }
  0x56   : > { %s2081_s22 = sshll.u32 %s490_s28, 3 }
  0x57   : > { %s492_s23 = scalar_lea.vmem [#allocation11], %s2081_s22 }
  0x58   : > { %1713 = dma.done.wait (%p2048_p5), %s479_s9, 128  }
  0x59   : > { %1715 = vsyncadd (%p2048_p5), %s479_s9, 4294967168  ;;  %s2303_s27 = sld [smem:[#allocation20_spill]]  ;;  %vm592_vm0 = vcmask 1040384   ;;  %vm593_vm1 = vsmask.f32 256  ;;  %v1361_v2 = vld [vmem:[%s2065_s1] sm:$0xff]  }
  0x5a   : > { %s2304_s4 = sld [smem:[#allocation19_spill]]  ;;  %vm2094_vm2 = vmand %vm592_vm0, %vm593_vm1  ;;  %v595_v1 = vld [vmem:[#allocation5] sm:$0x1]  ;;  %v599_v7 = vld [vmem:[#allocation5 + $0x1] sm:$0x1]  ;;  %v1363_v8 = vunpack.c.h.bf16 %v1361_v2  ;;  %v1362_v11 = vunpack.c.l.bf16 %v1361_v2  ;;  %s1779_s3 = smov 1  }
  0x5b   : > { %s2307_s10 = sld [smem:[#allocation29_spill]]  ;;  %v1365_v10 = vld [vmem:[%s482_s7] sm:$0xff]   ;;  %v1369_v18 = vld [vmem:[%s492_s23] sm:$0xff]   ;;  %s1780_s7 = smov 2   ;;  %vm674_vm3 = vcmask 1043456   ;;  %vm676_vm4 = vcmask 15360  }
  0x5c   : > { %v603_v12 = vld [vmem:[#allocation5 + $0x2] sm:$0x1]  ;;  %s2309_s29 = sld [smem:[#allocation31_spill]]  ;;  %v1367_v21 = vunpack.c.h.bf16 %v1365_v10  ;;  %v1366_v27 = vunpack.c.l.bf16 %v1365_v10  ;;  %v1371_v28 = vunpack.c.h.bf16 %v1369_v18  ;;  %v1370_v30 = vunpack.c.l.bf16 %v1369_v18  ;;  %s1047_s9 = scalar_lea.sflag [#allocation8], %s2061_s13 }
  0x5d   : > { %vm705_vm5 = vcmask 7168   ;;  %vm791_vm6 = vcmask 392192   ;;  %s2313_s23 = sld [smem:[#allocation35_spill]]  ;;  %vm933_vm7 = vcmask 261120   ;;  %vm928_vm8 = vcmask 1039360  }
  0x5e   : > { %s2315_s28 = sld [smem:[#allocation34_spill]]  ;;  %vm1001_vm9 = vcmask 1031168  }
  0x5f   : > { %p565_p2 = scmp.lt.s32.totalorder %s2303_s27, 1 }
  0x60   : > { %p567_p9 = scmp.lt.s32.totalorder %s2304_s4, 4  ;;  %s572_s12 = sadd.s32 1, %s2304_s4 }
  0x61   : > { %s566_s24 = scalar_select %p565_p2, %s2303_s27, 1 }
  0x62   : > { %s568_s25 = scalar_select %p567_p9, %s2304_s4, 4 }
  0x63   : > { %s1373_s8 = smul.u32 5, %s566_s24  ;;  %p575_p10 = scmp.lt.s32.totalorder %s572_s12, 4 }
  0x64   : > { %s581_s6 = sadd.s32 2, %s2304_s4  ;;  %s2308_s24 = sld [smem:[#allocation30_spill]] }
  0x65   : > { %s570_s11 = sadd.s32 %s1373_s8, %s568_s25  ;;  %p584_p11 = scmp.lt.s32.totalorder %s581_s6, 4 }
  0x66   : > { %s571_s18 = scalar_lea.vmem %s2307_s10, %s570_s11  ;;  %s2341_s12 = smov (!%p575_p10, %s572_s12), 4 }
  0x67   : > { %v608_v3 = vld [vmem:[%s571_s18] sm:$0x1]  ;;  %s2343_s6 = smov (!%p584_p11, %s581_s6), 4  ;;  %s578_s21 = sadd.s32 %s1373_s8, %s2341_s12 }
  0x68   : > { %v591_v4 = vld [vmem:[%s571_s18] sm:$0x1]  ;;  %v610_v5 = vpack.i.b16 %v608_v3, %v608_v3  ;;  %s587_s1 = sadd.s32 %s1373_s8, %s2343_s6  ;;  %s2310_s8 = sld [smem:[#allocation33_spill]] }
  0x69   : > { %v596_v6 = vsel %vm2094_vm2, %v591_v4, %v595_v1  ;;  %s588_s12 = scalar_lea.vmem %s2309_s29, %s587_s1  ;;  %s2314_s6 = smov %s2313_s23 }
  0x6a   : > { %597 = vst [vmem:[#allocation5] sm:$0x1] %v596_v6  ;;  %s579_s25 = scalar_lea.vmem %s2308_s24, %s578_s21  ;;  %v612_v9 = vperm.slane %v610_v5, 0  ;;  %v640_v19 = vld [vmem:[%s588_s12] sm:$0x1]  ;;  %s2311_s24 = sld [smem:[#allocation32_spill]] }
  0x6b   : > { %v624_v13 = vld [vmem:[%s579_s25] sm:$0x1]  ;;  %v642_v22 = vpack.i.b16 %v640_v19, %v640_v19  ;;  %s1374_s29 = smul.u32 6, %s2303_s27  ;;  %s2316_s10 = sld [smem:[#allocation36_spill]] }
  0x6c   : > { %v598_v14 = vld [vmem:[%s579_s25] sm:$0x1]  ;;  %v615_v15 = vunpack.c.l.bf16 %v612_v9  ;;  %v626_v16 = vpack.i.b16 %v624_v13, %v624_v13 }
  0x6d   : > { %v600_v17 = vsel %vm2094_vm2, %v598_v14, %v599_v7  ;;  %v602_v20 = vld [vmem:[%s588_s12] sm:$0x1]  ;;  %v644_v29 = vperm.slane %v642_v22, 0  ;;  %s1782_s12 = smov 127  }
  0x6e   : > { %601 = vst [vmem:[#allocation5 + $0x1] sm:$0x1] %v600_v17  ;;  %v604_v23 = vsel %vm2094_vm2, %v602_v20, %v603_v12  ;;  %v617_v24 = vmul.f32 %v1363_v8, %v615_v15  ;;  %v628_v25 = vperm.slane %v626_v16, 0  ;;  %v616_v26 = vmul.f32 %v1362_v11, %v615_v15  ;;  %v727_v16 = vld [vmem:[%s2310_s8] sm:$0xff] }
  0x6f   : > { %605 = vst [vmem:[#allocation5 + $0x2] sm:$0x1] %v604_v23  ;;  %v647_v34 = vunpack.c.l.bf16 %v644_v29  ;;  %v1781_v8 = vmov 0  }
  0x70   : > { %v619_v31 = vpack.c.bf16 %v617_v24, %v617_v24  ;;  %v631_v32 = vunpack.c.l.bf16 %v628_v25  ;;  %v618_v33 = vpack.c.bf16 %v616_v26, %v616_v26  ;;  %1529 = vset.pattern.permute.xlu1 %v1781_v8  ;;  %1522 = vset.pattern.permute.xlu2 %v1781_v8  ;;  %v729_v24 = vld [vmem:[%s2310_s8 + $0x10] sm:$0xff]  ;;  %v730_v25 = vld [vmem:[%s2310_s8 + $0x18] sm:$0xff]  ;;  %s2312_s1 = smov %s2311_s24 }
  0x71   : > { %v649_v37 = vmul.f32 %v1371_v28, %v647_v34  ;;  %v648_v38 = vmul.f32 %v1370_v30, %v647_v34  ;;  %1523 = vset.pattern.permute.xlu0 %v1781_v8 }
  0x72   : > { %621 = vst [vmem:[#allocation2 + $0xc] sm:$0xf] %v619_v31  ;;  %v633_v35 = vmul.f32 %v1367_v21, %v631_v32  ;;  %v632_v36 = vmul.f32 %v1366_v27, %v631_v32 }
  0x73   : > { %620 = vst [vmem:[#allocation2] sm:$0xf] %v618_v33  ;;  %v651_v41 = vpack.c.bf16 %v649_v37, %v649_v37  ;;  %v650_v42 = vpack.c.bf16 %v648_v38, %v648_v38 }
  0x74   : > { %v635_v39 = vpack.c.bf16 %v633_v35, %v633_v35  ;;  %v634_v40 = vpack.c.bf16 %v632_v36, %v632_v36 }
  0x75   : > { %653 = vst [vmem:[#allocation2 + $0x14] sm:$0xf] %v651_v41 }
  0x76   : > { %637 = vst [vmem:[#allocation2 + $0x10] sm:$0xf] %v635_v39  ;;  %v844_v63 = vld [vmem:[#allocation5] sm:$0x7] }
  0x77   : > { %636 = vst [vmem:[#allocation2 + $0x4] sm:$0xf] %v634_v40  ;;  %v845_v0 = vunpack.c.l.bf16 %v844_v63 }
  0x78   : > { %652 = vst [vmem:[#allocation2 + $0x8] sm:$0xf] %v650_v42  ;;  %v1343_v42 = vld [vmem:[%s2311_s24] sm:$0xff] }
  0x79   : > { %v847_v2 = vperm.slane %v845_v0, 0  ;;  %v848_v3 = vperm.slane %v845_v0, 2  ;;  %v849_v29 = vperm.slane %v845_v0, 4 }
  0x7b   : > { %v853_v5 = vperm.slane %v847_v2, 0  ;;  %v854_v6 = vperm.slane %v848_v3, 0  ;;  %v855_v35 = vperm.slane %v849_v29, 0 }
  0x7c   : > { %v687_v45 = vld [vmem:[#allocation2 + $0x14] sm:$0xf] }
  0x7d   : > { %v686_v43 = vld [vmem:[#allocation2 + $0xc] sm:$0xff]  ;;  %v657_v48 = vld [vmem:[#allocation2 + $0x14] sm:$0xf]  ;;  %v1524_v7 = vpack.i.bf16 %v854_v6, %v853_v5 }
  0x7e   : > { %696 = vrot.lane.b32.xlu1 %v686_v43, %s1779_s3  ;;  %v684_v44 = vld [vmem:[#allocation2] sm:$0xff]  ;;  %v714_v51 = vld [vmem:[#allocation2 + $0x10] sm:$0xff] }
  0x7f   : > { %692 = vrot.lane.b32.xlu0 %v684_v44, %s1779_s3  ;;  %662 = vrot.lane.b32.xlu2 %v684_v44, %s1780_s7  ;;  %v685_v46 = vld [vmem:[#allocation2 + $0x8] sm:$0xf]  ;;  %716 = vst [vmem:[#allocation3 + $0x28] sm:$0xff] %v714_v51 }
  0x80   : > { %v655_v47 = vld [vmem:[#allocation2 + $0x8] sm:$0xf] }
  0x81   : > { %v713_v50 = vld [vmem:[#allocation2 + $0x4] sm:$0xff] }
  0x82   : > { %715 = vst [vmem:[#allocation3 + $0x20] sm:$0xff] %v713_v50  ;;  %v1344_v44 = vld [vmem:[%s2312_s1 + $0x8] sm:$0xff] }
  0x86   : > { %698 = vrot.lane.b32.xlu1 %v687_v45, %s1779_s3  ;;  %v1350_v57 = vld [vmem:[#allocation3 + $0x24] sm:$0xf0]  ;;  %v1288_v58 = vld [vmem:[#allocation3 + $0x28] sm:$0xf0] }
  0x87   : > { %694 = vrot.lane.b32.xlu0 %v685_v46, %s1779_s3  ;;  %664 = vrot.lane.b32.xlu2 %v655_v47, %s1780_s7 }
  0x89   : > { %v1286_v54 = vld [vmem:[#allocation3 + $0x20] sm:$0xf]  ;;  %v1349_v55 = vld [vmem:[#allocation3 + $0x24] sm:$0xf] }
  0x8a   : > { %v1287_v59 = vor.u32 %v1350_v57, %v1286_v54  ;;  %v1291_v60 = vor.u32 %v1349_v55, %v1288_v58 }
  0x8c   : > { %803 = vmatpush.bf16.msra.mxu0 %v1287_v59  ;;  %822 = vmatpush.bf16.msra.mxu1 %v1291_v60 }
  0x8e   : > { %668 = vrot.lane.b32.xlu1 %v657_v48, %s1780_s7 }
  0x8f   : > { %666 = vrot.lane.b32.xlu0 %v686_v43, %s1780_s7  ;;  %743 = vperm.xlu2 %1522, %v729_v24   ;;  %v728_v43 = vld [vmem:[%s2310_s8 + $0x8] sm:$0xff] }
  0x96   : > { %1525 = vrot.lane.b32.xlu1 %v1524_v7, %s1779_s3 }
  0x97   : > { %748 = vperm.xlu0 %1523, %v730_v25   ;;  %863 = vrot.lane.b32.xlu2 %v855_v35, %s1779_s3  ;;  %s1783_s3 = smov 126  }
  0x9e   : > { %733 = vperm.xlu1 %1529, %v727_v16  }
  0x9f   : > { %738 = vperm.xlu2 %1522, %v728_v43  }
  0xd9   : > { %v663_v49 = vpop.permute.xlu2 %662 }
  0xda   : > { %v670_v52 = vrot.slane %v663_v49, 4 }
  0xe1   : > { %v665_v53 = vpop.permute.xlu2 %664 }
  0xe2   : > { %v671_v56 = vrot.slane %v665_v53, 4 }
  0xe4   : > { %v675_v61 = vsel %vm674_vm3, %v670_v52, %v671_v56 }
  0xe5   : > { %v677_v62 = vsel %vm676_vm4, %v663_v49, %v675_v61 }
  0xe6   : > { %682 = vst [vmem:[#allocation3] sm:$0xff] %v677_v62 }
  0xe9   : > { %v744_v45 = vpop.permute.xlu2 %743 }
  0xed   : > { %v1270_v36 = vld [vmem:[#allocation3] sm:$0xf]  ;;  %v1345_v38 = vld [vmem:[#allocation3 + $0x4] sm:$0xf] }
  0xf0   : > { %v697_v1 = vpop.permute.xlu1 %696 }
  0xf1   : > { %v693_v4 = vpop.permute.xlu0 %692  ;;  %v702_v10 = vrot.slane %v697_v1, 4  ;;  %v864_v47 = vpop.permute.xlu2 %863 }
  0xf2   : > { %v700_v13 = vrot.slane %v693_v4, 4 }
  0xf8   : > { %v699_v9 = vpop.permute.xlu1 %698 }
  0xf9   : > { %v703_v11 = vrot.slane %v699_v9, 4  ;;  %v695_v12 = vpop.permute.xlu0 %694  ;;  %v739_v61 = vpop.permute.xlu2 %738 }
  0xfa   : > { %v701_v14 = vrot.slane %v695_v12, 4 }
  0xfb   : > { %v707_v15 = vsel %vm674_vm3, %v702_v10, %v703_v11 }
  0xfc   : > { %v708_v17 = vsel %vm705_vm5, %v697_v1, %v707_v15  ;;  %v704_v18 = vsel %vm674_vm3, %v700_v13, %v701_v14 }
  0xfd   : > { %712 = vst [vmem:[#allocation3 + $0x18] sm:$0xff] %v708_v17  ;;  %v706_v19 = vsel %vm705_vm5, %v693_v4, %v704_v18 }
  0xfe   : > { %711 = vst [vmem:[#allocation3 + $0x10] sm:$0xff] %v706_v19 }
 0x100   : > { %v669_v20 = vpop.permute.xlu1 %668 }
 0x101   : > { %v673_v21 = vrot.slane %v669_v20, 4  ;;  %v667_v22 = vpop.permute.xlu0 %666 }
 0x102   : > { %v672_v23 = vrot.slane %v667_v22, 4 }
 0x104   : > { %v678_v26 = vsel %vm674_vm3, %v672_v23, %v673_v21  ;;  %v1348_v27 = vld [vmem:[#allocation3 + $0x14] sm:$0xf0]  ;;  %v1280_v28 = vld [vmem:[#allocation3 + $0x18] sm:$0xf0] }
 0x105   : > { %v679_v30 = vsel %vm676_vm4, %v667_v22, %v678_v26  ;;  %v1278_v31 = vld [vmem:[#allocation3 + $0x10] sm:$0xf]  ;;  %v1347_v32 = vld [vmem:[#allocation3 + $0x14] sm:$0xf] }
 0x106   : > { %683 = vst [vmem:[#allocation3 + $0x8] sm:$0xff] %v679_v30  ;;  %v1279_v33 = vor.u32 %v1348_v27, %v1278_v31  ;;  %v1283_v34 = vor.u32 %v1347_v32, %v1280_v28 }
 0x108   : > { %804 = vmatpush.bf16.msra.mxu0 %v1279_v33  ;;  %823 = vmatpush.bf16.msra.mxu1 %v1283_v34  ;;  %v1526_v46 = vpop.permute.xlu1 %1525 }
 0x109   : > { %v1528_v48 = vunpack.i.h.bf16 %v1526_v46  ;;  %v1527_v49 = vunpack.i.l.bf16 %v1526_v46  ;;  %v749_v16 = vpop.permute.xlu0 %748  ;;  %v1026_v46 = vld [vmem:[%s2314_s6 + $0x8] sm:$0xff] }
 0x10b   : > { %v866_v55 = vsel %vm705_vm5, %v1527_v49, %v1528_v48  ;;  %v867_v56 = vsel %vm705_vm5, %v1528_v48, %v864_v47  ;;  %v1351_v47 = vld [vmem:[%s2315_s28] sm:$0xff] }
 0x10d   : > { %v1346_v37 = vld [vmem:[#allocation3 + $0x4] sm:$0xf0]  ;;  %v1272_v39 = vld [vmem:[#allocation3 + $0x8] sm:$0xf0] }
 0x10e   : > { %v1271_v40 = vor.u32 %v1346_v37, %v1270_v36  ;;  %v1275_v41 = vor.u32 %v1345_v38, %v1272_v39 }
 0x110   : > { %805 = vmatpush.bf16.msra.mxu0 %v1271_v40  ;;  %824 = vmatpush.bf16.msra.mxu1 %v1275_v41  ;;  %v734_v50 = vpop.permute.xlu1 %733 }
 0x113   : > { %1292 = vmatmul.msk.bf16.vlgmr.msra.gmra.mxu0 %vm791_vm6, %v1343_v42  ;;  %1294 = vmatmul.msk.bf16.vlgmr.msra.gmra.mxu1 %vm791_vm6, %v1343_v42 }
 0x123   : > { %1293 = vmatmul.msk.bf16.gmra.mxu0 %vm791_vm6, %v1344_v44  ;;  %1295 = vmatmul.msk.bf16.gmra.mxu1 %vm791_vm6, %v1344_v44  ;;  %v1025_v44 = vld [vmem:[%s2313_s23] sm:$0xff] }
 0x190   : > { %v807_v51 = vpop.f32.mrf.mxu0  ;;  %v826_v52 = vpop.f32.mrf.mxu1 }
 0x191   : > { %v808_v53 = vadd.f32 %v807_v51, %v734_v50  ;;  %v827_v54 = vadd.f32 %v826_v52, %v734_v50 }
 0x193   : > { %v836_v57 = vmax.f32 %v808_v53, 0.0  ;;  %v837_v58 = vmax.f32 %v827_v54, 0.0 }
 0x195   : > { %v870_v59 = vmul.f32 %v866_v55, %v836_v57  ;;  %v871_v60 = vmul.f32 %v867_v56, %v837_v58  ;;  %v1354_v57 = vld [vmem:[%s2315_s28 + $0x8] sm:$0xff] }
 0x197   : > { %v878_v62 = vpack.c.bf16 %v871_v60, %v870_v59 }
 0x198   : > { %v809_v63 = vpop.f32.mrf.mxu0  ;;  %v828_v0 = vpop.f32.mrf.mxu1 }
 0x199   : > { %882 = vst [vmem:[#allocation4] sm:$0xff] %v878_v62  ;;  %v810_v1 = vadd.f32 %v809_v63, %v739_v61  ;;  %v829_v2 = vadd.f32 %v828_v0, %v739_v61  ;;  %v1359_v61 = vld [vmem:[%s2315_s28 + $0x10] sm:$0xff] }
 0x19b   : > { %v838_v3 = vmax.f32 %v810_v1, 0.0  ;;  %v839_v4 = vmax.f32 %v829_v2, 0.0  ;;  %v1039_v1 = vld [vmem:[#allocation5 + $0x1] sm:$0x1] }
 0x19c   : > { %v1040_v2 = vunpack.c.l.bf16 %v1039_v1 }
 0x19d   : > { %v872_v5 = vmul.f32 %v866_v55, %v838_v3  ;;  %v873_v6 = vmul.f32 %v867_v56, %v839_v4 }
 0x19f   : > { %v879_v7 = vpack.c.bf16 %v873_v6, %v872_v5  ;;  %v1041_v6 = vperm.slane %v1040_v2, 0 }
 0x1a0   : > { %v812_v8 = vpop.f32.mrf.mxu0  ;;  %v831_v9 = vpop.f32.mrf.mxu1  ;;  %v1304_v20 = vld [vmem:[#allocation4] sm:$0xf]  ;;  %v1355_v43 = vld [vmem:[#allocation4 + $0x4] sm:$0xf] }
 0x1a1   : > { %883 = vst [vmem:[#allocation4 + $0x8] sm:$0xff] %v879_v7  ;;  %v813_v10 = vadd.f32 %v812_v8, %v744_v45  ;;  %v832_v11 = vadd.f32 %v831_v9, %v744_v45  ;;  %v1325_v40 = vld [vmem:[#allocation4] sm:$0xf] }
 0x1a3   : > { %v840_v12 = vmax.f32 %v813_v10, 0.0  ;;  %v841_v13 = vmax.f32 %v832_v11, 0.0 }
 0x1a5   : > { %v874_v14 = vmul.f32 %v866_v55, %v840_v12  ;;  %v875_v15 = vmul.f32 %v867_v56, %v841_v13 }
 0x1a7   : > { %v880_v17 = vpack.c.bf16 %v875_v15, %v874_v14 }
 0x1a8   : > { %v814_v18 = vpop.f32.mrf.mxu0  ;;  %v833_v19 = vpop.f32.mrf.mxu1  ;;  %v1356_v21 = vld [vmem:[#allocation4 + $0x4] sm:$0xf0]  ;;  %v1306_v42 = vld [vmem:[#allocation4 + $0x8] sm:$0xf0] }
 0x1a9   : > { %884 = vst [vmem:[#allocation4 + $0x10] sm:$0xff] %v880_v17  ;;  %v815_v22 = vadd.f32 %v814_v18, %v749_v16  ;;  %v834_v23 = vadd.f32 %v833_v19, %v749_v16  ;;  %v1305_v24 = vor.u32 %v1356_v21, %v1304_v20  ;;  %v1352_v39 = vld [vmem:[#allocation4 + $0x4] sm:$0xf0]  ;;  %v1309_v45 = vor.u32 %v1355_v43, %v1306_v42 }
 0x1aa   : > { %v1326_v41 = vor.u32 %v1352_v39, %v1325_v40 }
 0x1ab   : > { %v842_v25 = vmax.f32 %v815_v22, 0.0  ;;  %v843_v26 = vmax.f32 %v834_v23, 0.0  ;;  %920 = vrot.lane.b32.xlu2 %v1305_v24, %s1782_s12 }
 0x1ad   : > { %v876_v27 = vmul.f32 %v866_v55, %v842_v25  ;;  %v877_v28 = vmul.f32 %v867_v56, %v843_v26 }
 0x1af   : > { %v881_v29 = vpack.c.bf16 %v877_v28, %v876_v27 }
 0x1b0   : > { %v1312_v30 = vld [vmem:[#allocation4 + $0x10] sm:$0xf]  ;;  %v1357_v31 = vld [vmem:[#allocation4 + $0x14] sm:$0xf] }
 0x1b1   : > { %885 = vst [vmem:[#allocation4 + $0x18] sm:$0xff] %v881_v29  ;;  %v1329_v32 = vld [vmem:[#allocation4 + $0x10] sm:$0xf] }
 0x1b8   : > { %v1358_v33 = vld [vmem:[#allocation4 + $0x14] sm:$0xf0]  ;;  %v1314_v34 = vld [vmem:[#allocation4 + $0x18] sm:$0xf0] }
 0x1b9   : > { %v1353_v35 = vld [vmem:[#allocation4 + $0x14] sm:$0xf0]  ;;  %v1313_v36 = vor.u32 %v1358_v33, %v1312_v30  ;;  %v1317_v37 = vor.u32 %v1357_v31, %v1314_v34 }
 0x1ba   : > { %v1330_v38 = vor.u32 %v1353_v35, %v1329_v32 }
 0x1bb   : > { %924 = vrot.lane.b32.xlu0 %v1313_v36, %s1782_s12  ;;  %926 = vrot.lane.b32.xlu1 %v1317_v37, %s1782_s12 }
 0x1bc   : > { %977 = vmatpush.bf16.msra.mxu3 %v1330_v38  ;;  %999 = vrot.lane.b32.xlu2 %v1317_v37, %s1783_s3 }
 0x1c0   : > { %978 = vmatpush.bf16.msra.mxu3 %v1326_v41 }
 0x1c3   : > { %997 = vrot.lane.b32.xlu1 %v1313_v36, %s1783_s3  ;;  %922 = vrot.lane.b32.xlu0 %v1309_v45, %s1782_s12  ;;  %s1057_s12 = sadd.s32 %s2304_s4, %s1374_s29  ;;  %s1640_s29 = scalar_lea.hbm %s2316_s10, 96 }
 0x1c4   : > { %1029 = vperm.xlu2 %1522, %v1025_v44   ;;  %1331 = vmatmul.msk.bf16.vlgmr.msra.gmra.mxu3 %vm933_vm7, %v1351_v47  ;;  %s1340_s7 = sshll.u32 %s1057_s12, 3 }
 0x1c5   : > { %s1059_s18 = scalar_lea.hbm %s2316_s10, %s1340_s7 }
 0x1c6   : > { %s1062_s4 = sshll.u32 %s1059_s18, 4  ;;  %s1063_s4 = int_to_ptr.hbm [resolvable:$true] %s1062_s4 }
 0x1c7   : > { %s1634_s24 = sshra.s32 %s1063_s4, 4  ;;  %s1635_s24 = int_to_ptr.hbm [resolvable:$true] %s1634_s24 }
 0x1c8   : > { %s1636_s25 = scalar_lea.hbm %s1635_s24, 16  ;;  %p1641_p6 = scmp.lt.s32.totalorder %s1635_s24, %s2316_s10 }
 0x1c9   : > { %p1637_p3 = scmp.ne.s32.totalorder %s1635_s24, %s1636_s25  ;;  %p1642_p8 = scmp.lt.s32.totalorder %s1640_s29, %s1636_s25 }
 0x1cb   : > { %995 = vrot.lane.b32.xlu1 %v1309_v45, %s1783_s3  ;;  %993 = vrot.lane.b32.xlu0 %v1305_v24, %s1783_s3  ;;  %s1259_s3 = sshll.u32 %s2061_s13, 4  ;;  %p1638_p13 = pnand %p1637_p3, %p2010_p7 }
 0x1cc   : > { %s562_s21 = scalar_lea.vmem [#allocation12], %s1259_s3  ;;  %p1643_p12 = por %p1642_p8, %p1641_p6 }
 0x1cd   : > { %s1060_s27 = sshll.u32 %s562_s21, 4  ;;  %p1639_p4 = pneg %p1638_p13  ;;  %s1061_s27 = int_to_ptr.vmem [resolvable:$true] %s1060_s27 }
 0x1cf   : > { %p1644_p5 = pnand %p1643_p12, %p1639_p4 }
 0x1d3   : > { %1034 = vperm.xlu0 %1523, %v1026_v46  }
 0x205   : > { %v921_v48 = vpop.permute.xlu2 %920 }
 0x216   : > { %v1000_v52 = vpop.permute.xlu2 %999 }
 0x21e   : > { %v1030_v7 = vpop.permute.xlu2 %1029 }
 0x22d   : > { %v925_v49 = vpop.permute.xlu0 %924  ;;  %v927_v50 = vpop.permute.xlu1 %926 }
 0x22e   : > { %v930_v51 = vsel %vm928_vm8, %v925_v49, %v927_v50 }
 0x22f   : > { %943 = vmatpush.bf16.msra.mxu2 %v930_v51 }
 0x235   : > { %v998_v53 = vpop.permute.xlu1 %997  ;;  %v923_v54 = vpop.permute.xlu0 %922 }
 0x236   : > { %v929_v55 = vsel %vm928_vm8, %v921_v48, %v923_v54  ;;  %v1003_v56 = vsel %vm1001_vm9, %v998_v53, %v1000_v52 }
 0x237   : > { %944 = vmatpush.bf16.msra.mxu2 %v929_v55 }
 0x23a   : > { %1318 = vmatmul.msk.bf16.vlgmr.msra.gmra.mxu2 %vm933_vm7, %v1354_v57 }
 0x23b   : > { %1015 = vmatpush.bf16.msrb.mxu2 %v1003_v56 }
 0x23d   : > { %v996_v58 = vpop.permute.xlu1 %995  ;;  %v994_v59 = vpop.permute.xlu0 %993 }
 0x23e   : > { %v1002_v60 = vsel %vm1001_vm9, %v994_v59, %v996_v58 }
 0x23f   : > { %1016 = vmatpush.bf16.msrb.mxu2 %v1002_v60 }
 0x245   : > { %v1035_v14 = vpop.permute.xlu0 %1034 }
 0x247   : > { %v980_v0 = vpop.f32.mrf.mxu3 }
 0x24a   : > { %1338 = vmatmul.msk.bf16.vlgmr.msrb.gmra.mxu2 %vm933_vm7, %v1359_v61 }
 0x24f   : > { %v982_v9 = vpop.f32.mrf.mxu3 }
 0x2bd   : > { %v946_v62 = vpop.f32.mrf.mxu2 }
 0x2be   : > { %v981_v3 = vadd.f32 %v980_v0, %v946_v62 }
 0x2c5   : > { %v948_v63 = vpop.f32.mrf.mxu2 }
 0x2c6   : > { %v983_v11 = vadd.f32 %v982_v9, %v948_v63 }
 0x2cd   : > { %v1018_v4 = vpop.f32.mrf.mxu2 }
 0x2ce   : > { %v1023_v5 = vadd.f32 %v1018_v4, %v981_v3 }
 0x2d0   : > { %v1037_v8 = vadd.f32 %v1030_v7, %v1023_v5 }
 0x2d2   : > { %v1042_v10 = vmul.f32 %v1041_v6, %v1037_v8 }
 0x2d4   : > { %1044 = vst [vmem:[%s562_s21] sm:$0xff] %v1042_v10 }
 0x2d5   : > { %v1020_v12 = vpop.f32.mrf.mxu2 }
 0x2d6   : > { %v1024_v13 = vadd.f32 %v1020_v12, %v983_v11 }
 0x2d8   : > { %v1038_v15 = vadd.f32 %v1035_v14, %v1024_v13 }
 0x2da   : > { %v1043_v16 = vmul.f32 %v1041_v6, %v1038_v15 }
 0x2dc   : > { %1045 = vst [vmem:[%s562_s21 + $0x8] sm:$0xff] %v1043_v16 }
 0x2dd   : > { %1647 = shalt.err (!%p1644_p5)
}
 0x2de   : > { %s1784_s13 = smov 128   ;;  %s1785_s7 = smov 384  }
 0x2df   : > { %s1786_s22 = smov 8  }
 0x2e0   : > { %1381 = dma.vmem_to_hbm [thread:$0]  (%p2010_p7), %s1061_s27, 256, %s1063_s4, %s1047_s9, %s1784_s13, %s1785_s7, %s1786_s22  }
 0x2e1 PF: > { %p1398_p1 = scmp.ge.s32.totalorder %s1774_s26, 2  ;;  %s1077_s18 = sand.u32 1, %s1746_s19  }
 0x2e2   : > { %s1078_s21 = scalar_lea.sflag [#allocation8], %s1077_s18 }
 0x2e3   : > { %p1394_p2 = pnand %p1398_p1, %p2014_p0 }
 0x2e5   : > { %p1395_p9 = pneg %p1394_p2 }
 0x2e7   : > { %1717 = dma.done.wait (%p1395_p9), %s1078_s21, 256  }
 0x2e8   : > { %1719 = vsyncadd (%p1395_p9), %s1078_s21, 4294967040  ;;  %s29_s26 = sadd.s32 1, %s1774_s26   ;;  %s2319_s27 = sld [smem:[#allocation17_spill]] }
 0x2e9   : > { %p2192_p10 = scmp.ge.s32.totalorder %s29_s26, 8   ;;  %s2320_s18 = sld [smem:[#allocation25_spill]] }
 0x2ea   : > { %s2321_s4 = sld [smem:[#allocation18_spill]]  ;;  %s2328_s13 = smov %s1726_s14 }
 0x2eb   : > { %s2322_s21 = sld [smem:[#allocation26_spill]]  ;;  %s2329_s14 = smov %s1730_s15 }
 0x2ec   : > { %s2323_s22 = sld [smem:[#allocation21_spill]]  ;;  %s2330_s15 = smov %s2035_s30 }
 0x2ed   : > { %s2324_s23 = sld [smem:[#allocation22_spill]]  ;;  %s2331_s16 = smov %s1738_s17 }
 0x2ee   : > { %s2325_s9 = sld [smem:[#allocation23_spill]]  ;;  %s2332_s17 = smov %s2319_s27 }
 0x2ef   : > { %s2326_s25 = sld [smem:[#allocation24_spill]]  ;;  %s2333_s19 = smov %s1750_s20 }
 0x2f0   : > { %s2334_s20 = smov %s2321_s4  ;;  %28 = sbr.rel (!%p2192_p10) target bundleno = 22 (0x16), region = 140 }
 0x2f4   : > { %s2335_s24 = smov %s2325_s9 }
 0x2f5   :  { %1084 = vsyncpa [#allocation7], 1 }
 0x2f6   :  { %1086 = vsyncpa [#allocation7 + $0x1], 1 }
 0x2f7   :  { %1087 = vsyncpa [#allocation10], 1 }
 0x2f8   :  { %1089 = vsyncpa [#allocation10 + $0x1], 1 }
 0x2f9   :  { %1090 = vsyncpa [#allocation8], 1 }
 0x2fa   :  { %1092 = vsyncpa [#allocation8 + $0x1], 1 }

</bundles_post_ra>
